<compile_context>
chip_gen: v6e
topology: v6e:2x2x1
jax: 0.10.0
libtpu: 0.0.40
codegen_flags: <defaults>
</compile_context>

<pallas_src>
import jax
import jax.numpy as jnp
from jax.experimental import pallas as pl
from jax.experimental.pallas import tpu as pltpu

# ---------------------------------------------------------------------------
# Scaled-down config (embed_dim is fixed to 8 by the 8-way concat in forward).
# ---------------------------------------------------------------------------
FEATURE_DIM = 16
EMBED_DIM = 8
OUT_CHANNELS = 32
KERNEL_SIZE = 8
STRIDE = 2
HIDDEN = 32
ATTN = 32
NUM_DIRS = 2                       # bidirectional
RNN_SIZE = NUM_DIRS * HIDDEN       # 64
L_OUT = (FEATURE_DIM - KERNEL_SIZE) // STRIDE + 1   # 5
BATCH = 4
BN_EPS = 1e-5

D2 = RNN_SIZE                      # 64: packed state width (both directions)
STEP_G = 4 * D2                    # 256: packed gate width per step (both dirs)
OUT_LANES = 128                    # lane-dense output block


# ---------------------------------------------------------------------------
# Pallas kernel: whole forward pass, single grid point, everything in VMEM.
# ---------------------------------------------------------------------------
def attention_rcnn_kernel(x_ref, w0_ref, w1_ref, whh_ref, fc_ref, out_ref):
    B = x_ref.shape[0]             # padded batch (multiple of 8)
    H = HIDDEN

    # ---- layer-0 input projection: BN + embed-concat + Conv1d + im2col +
    # W_ih0 + biases all folded into w0 at pack time -> ONE matmul.
    xp0 = (jnp.dot(x_ref[...], w0_ref[0:FEATURE_DIM, :],
                   preferred_element_type=jnp.float32)
           + w0_ref[FEATURE_DIM:FEATURE_DIM + 1, :])          # (B, L_OUT*256)

    # Lane masks (gate columns interleaved [i_f i_r | f_f f_r | o_f o_r | g_f g_r]).
    lane_g = jax.lax.broadcasted_iota(jnp.int32, (B, STEP_G), 1)
    fwd_gate_mask = (lane_g % D2) < H                         # fwd-direction gate lanes
    lane_h = jax.lax.broadcasted_iota(jnp.int32, (B, D2), 1)
    fwd_h_mask = lane_h < H                                   # fwd half of packed state

    def cell_update(gates, c):
        # gates (B, 256): one sigmoid over lanes [0:192], one tanh over [192:256].
        sig = jax.nn.sigmoid(gates[:, 0:3 * D2])
        g = jnp.tanh(gates[:, 3 * D2:])
        i = sig[:, 0:D2]
        f = sig[:, D2:2 * D2]
        o = sig[:, 2 * D2:3 * D2]
        c_new = f * c + i * g                                 # (B, 64) = [c_f | c_r]
        h_new = o * jnp.tanh(c_new)                           # (B, 64) = [h_f | h_r]
        return h_new, c_new

    # ---- layer 0: both directions advance together; one fused 256-wide
    # recurrent matmul per step. Step s consumes timestep s (fwd) and L-1-s (rev);
    # that alignment is baked into the per-step blocks of w0.
    whh0 = whh_ref[0:D2, :]
    h = jnp.zeros((B, D2), jnp.float32)
    c = jnp.zeros((B, D2), jnp.float32)
    hs = [None] * L_OUT
    for s in range(L_OUT):
        gates = xp0[:, s * STEP_G:(s + 1) * STEP_G] + jnp.dot(
            h, whh0, preferred_element_type=jnp.float32)
        h, c = cell_update(gates, c)
        hs[s] = h                                             # [h_f(s) | h_r(L-1-s)]

    # Re-time-align layer-0 outputs: l0(t) = [h_f(t) | h_r(t)] via lane select.
    l0_all = jnp.concatenate(
        [jnp.where(fwd_h_mask, hs[t], hs[L_OUT - 1 - t]) for t in range(L_OUT)],
        axis=0)                                               # (L_OUT*B, 64)

    # ---- layer-1 hoisted input projection (one matmul, biases folded in).
    xp1 = (jnp.dot(l0_all, w1_ref[0:D2, :], preferred_element_type=jnp.float32)
           + w1_ref[D2:D2 + 1, :])                            # (L_OUT*B, 256)

    # ---- layer 1 + time reduction. Softmax over the size-1 attention axis is
    # identically 1.0, so fc_in == sum_t rnn_out[t]; accumulate in-loop.
    whh1 = whh_ref[D2:2 * D2, :]
    h = jnp.zeros((B, D2), jnp.float32)
    c = jnp.zeros((B, D2), jnp.float32)
    acc = jnp.zeros((B, D2), jnp.float32)
    for s in range(L_OUT):
        tr = L_OUT - 1 - s
        gates_in = jnp.where(fwd_gate_mask,
                             xp1[s * B:(s + 1) * B, :],       # fwd gates, timestep s
                             xp1[tr * B:(tr + 1) * B, :])     # rev gates, timestep L-1-s
        gates = gates_in + jnp.dot(h, whh1, preferred_element_type=jnp.float32)
        h, c = cell_update(gates, c)
        acc = acc + h

    # ---- final fc as a lane-dense (B,64)@(64,128) matmul (result in lane 0).
    out_ref[...] = (jnp.dot(acc, fc_ref[0:D2, :], preferred_element_type=jnp.float32)
                    + fc_ref[D2:D2 + 1, :])


# ---------------------------------------------------------------------------
# One-time weight packing (kept OUT of the per-call path).
# ---------------------------------------------------------------------------
def _reorder_ifog(w):
    # torch gate row order (i, f, g, o) -> (i, f, o, g)
    wi, wf_, wg, wo = jnp.split(w, 4, axis=0)
    return jnp.concatenate([wi, wf_, wo, wg], axis=0)


def _interleave_cols(w_f, w_r):
    # (in, 128) per direction with column blocks [i|f|o|g] (32 each) ->
    # (in, 256) with columns [i_f i_r | f_f f_r | o_f o_r | g_f g_r].
    blocks = []
    for gi in range(4):
        blocks.append(w_f[:, gi * HIDDEN:(gi + 1) * HIDDEN])
        blocks.append(w_r[:, gi * HIDDEN:(gi + 1) * HIDDEN])
    return jnp.concatenate(blocks, axis=1)


def pack_params(p):
    def dir_weights(prefix):
        w_ih = _reorder_ifog(p[prefix + '_w_ih']).T                       # (in, 128)
        w_hh = _reorder_ifog(p[prefix + '_w_hh']).T                       # (32, 128)
        b = _reorder_ifog((p[prefix + '_b_ih'] + p[prefix + '_b_hh'])[:, None])[:, 0]
        return w_ih, w_hh, b

    wih0f, whh0f, b0f = dir_weights('l0f')
    wih0r, whh0r, b0r = dir_weights('l0r')
    wih1f, whh1f, b1f = dir_weights('l1f')
    wih1r, whh1r, b1r = dir_weights('l1r')

    # Conv1d folded: its 8 input channels are identical copies of bn, so the
    # embed axis is summed into the weights; then conv_w/conv_b are pushed
    # through the layer-0 input projection (no nonlinearity in between).
    conv_w_sum = p['conv_w'].sum(axis=1).T                                # (K, C)
    w_comb_f = conv_w_sum @ wih0f                                         # (K, 128)
    w_comb_r = conv_w_sum @ wih0r
    b_comb_f = p['conv_b'] @ wih0f + b0f                                  # (128,)
    b_comb_r = p['conv_b'] @ wih0r + b0r

    # Fold the strided im2col into the weights: step block s reads the fwd
    # window at t=s and the rev window at t=L-1-s directly from the features.
    step_blocks = []
    for s in range(L_OUT):
        tr = L_OUT - 1 - s
        blk_f = jnp.zeros((FEATURE_DIM, 4 * HIDDEN), jnp.float32)
        blk_f = blk_f.at[s * STRIDE:s * STRIDE + KERNEL_SIZE, :].set(w_comb_f)
        blk_r = jnp.zeros((FEATURE_DIM, 4 * HIDDEN), jnp.float32)
        blk_r = blk_r.at[tr * STRIDE:tr * STRIDE + KERNEL_SIZE, :].set(w_comb_r)
        step_blocks.append(_interleave_cols(blk_f, blk_r))
    w0_all = jnp.concatenate(step_blocks, axis=1)                         # (F, L*256)
    bias0 = jnp.tile(_interleave_cols(b_comb_f[None, :], b_comb_r[None, :]),
                     (1, L_OUT))                                          # (1, L*256)

    # Fold eval-mode BatchNorm: bn = x*scale + shift  =>  x @ (scale*W) + shift@W.
    bn_scale = p['bn_gamma'] / jnp.sqrt(p['bn_var'] + BN_EPS)
    bn_shift = p['bn_beta'] - p['bn_mean'] * bn_scale
    w0_folded = bn_scale[:, None] * w0_all
    bias0_folded = bias0 + bn_shift[None, :] @ w0_all

    w0_pack = jnp.concatenate(
        [w0_folded, bias0_folded,
         jnp.zeros((7, L_OUT * STEP_G), jnp.float32)], axis=0)            # (24, 1280)

    w1 = _interleave_cols(wih1f, wih1r)                                   # (64, 256)
    b1 = _interleave_cols(b1f[None, :], b1r[None, :])                     # (1, 256)
    w1_pack = jnp.concatenate([w1, b1, jnp.zeros((7, STEP_G), jnp.float32)],
                              axis=0)                                     # (72, 256)

    def block_diag(whh_f, whh_r):
        top = _interleave_cols(whh_f, jnp.zeros_like(whh_r))              # h_f rows
        bot = _interleave_cols(jnp.zeros_like(whh_f), whh_r)              # h_r rows
        return jnp.concatenate([top, bot], axis=0)                        # (64, 256)

    whh_pack = jnp.concatenate([block_diag(whh0f, whh0r),
                                block_diag(whh1f, whh1r)], axis=0)        # (128, 256)

    fc_w = jnp.zeros((RNN_SIZE, OUT_LANES), jnp.float32).at[:, 0].set(p['wf'][0])
    fc_b = jnp.zeros((1, OUT_LANES), jnp.float32).at[0, 0].set(p['bf'][0])
    fc_pack = jnp.concatenate([fc_w, fc_b, jnp.zeros((7, OUT_LANES), jnp.float32)],
                              axis=0)                                     # (72, 128)

    # Note: wl / bl / wg / attn_scale never reach the kernel: the size-1
    # softmax makes that branch mathematically dead (alpha is identically 1).
    return (w0_pack, w1_pack, whh_pack, fc_pack)


# ---------------------------------------------------------------------------
# Per-call runner: pad batch to a sublane multiple and launch the kernel.
# ---------------------------------------------------------------------------
@jax.jit
def _run_packed(x, w0_pack, w1_pack, whh_pack, fc_pack):
    b = x.shape[0]
    b_pad = max(8, ((b + 7) // 8) * 8)
    x_pad = jnp.zeros((b_pad, FEATURE_DIM), jnp.float32).at[:b, :].set(x)
    inputs = (x_pad, w0_pack, w1_pack, whh_pack, fc_pack)
    out = pl.pallas_call(
        attention_rcnn_kernel,
        out_shape=jax.ShapeDtypeStruct((b_pad, OUT_LANES), jnp.float32),
        in_specs=[pl.BlockSpec(memory_space=pltpu.MemorySpace.VMEM)] * len(inputs),
        out_specs=pl.BlockSpec(memory_space=pltpu.MemorySpace.VMEM),
    )(*inputs)
    return out[:b, 0]


def attention_rcnn_pallas(x, packed):
    return _run_packed(x, *packed)


# ---------------------------------------------------------------------------
# Deterministic parameter init (torch layouts) + pure-JAX reference.
# ---------------------------------------------------------------------------
def init_params(key):
    ks = jax.random.split(key, 32)

    def u(k, shape, scale):
        return jax.random.uniform(k, shape, jnp.float32, -1.0, 1.0) * scale

    p = {}
    p['bn_gamma'] = 1.0 + u(ks[0], (FEATURE_DIM,), 0.1)
    p['bn_beta'] = u(ks[1], (FEATURE_DIM,), 0.1)
    p['bn_mean'] = u(ks[2], (FEATURE_DIM,), 0.5)
    p['bn_var'] = 1.0 + jnp.abs(u(ks[3], (FEATURE_DIM,), 0.5))
    p['conv_w'] = u(ks[4], (OUT_CHANNELS, EMBED_DIM, KERNEL_SIZE), 0.2)
    p['conv_b'] = u(ks[5], (OUT_CHANNELS,), 0.1)
    i = 6
    for layer, in_dim in ((0, OUT_CHANNELS), (1, RNN_SIZE)):
        for d in ('f', 'r'):
            pref = f'l{layer}{d}'
            p[pref + '_w_ih'] = u(ks[i], (4 * HIDDEN, in_dim), 0.2); i += 1
            p[pref + '_w_hh'] = u(ks[i], (4 * HIDDEN, HIDDEN), 0.2); i += 1
            p[pref + '_b_ih'] = u(ks[i], (4 * HIDDEN,), 0.1); i += 1
            p[pref + '_b_hh'] = u(ks[i], (4 * HIDDEN,), 0.1); i += 1
    p['wl'] = u(ks[i], (ATTN, RNN_SIZE), 0.2); i += 1
    p['bl'] = u(ks[i], (ATTN,), 0.1); i += 1
    p['wg'] = u(ks[i], (ATTN, RNN_SIZE), 0.2); i += 1
    p['attn_scale'] = u(ks[i], (ATTN, 1), 0.5); i += 1
    p['wf'] = u(ks[i], (1, RNN_SIZE), 0.2); i += 1
    p['bf'] = u(ks[i], (1,), 0.1); i += 1
    return p


def reference_forward(x, p):
    B = x.shape[0]
    bn = (x - p['bn_mean']) / jnp.sqrt(p['bn_var'] + BN_EPS) * p['bn_gamma'] + p['bn_beta']
    conv_in = jnp.broadcast_to(bn[:, None, :], (B, EMBED_DIM, FEATURE_DIM))
    w = p['conv_w'].reshape(OUT_CHANNELS, EMBED_DIM * KERNEL_SIZE)
    conv_seq = []
    for t in range(L_OUT):
        patch = conv_in[:, :, t * STRIDE:t * STRIDE + KERNEL_SIZE].reshape(B, -1)
        conv_seq.append(patch @ w.T + p['conv_b'])

    def run_dir(seq, pref, reverse):
        w_ih = p[pref + '_w_ih']; w_hh = p[pref + '_w_hh']
        b = p[pref + '_b_ih'] + p[pref + '_b_hh']
        h = jnp.zeros((B, HIDDEN), jnp.float32)
        c = jnp.zeros((B, HIDDEN), jnp.float32)
        ordered = seq[::-1] if reverse else seq
        outs = []
        for x_t in ordered:
            gates = x_t @ w_ih.T + h @ w_hh.T + b
            ig, fg, gg, og = jnp.split(gates, 4, axis=1)
            ig = jax.nn.sigmoid(ig); fg = jax.nn.sigmoid(fg)
            gg = jnp.tanh(gg); og = jax.nn.sigmoid(og)
            c = fg * c + ig * gg
            h = og * jnp.tanh(c)
            outs.append(h)
        return outs[::-1] if reverse else outs

    l0 = [jnp.concatenate([f, r], axis=1) for f, r in
          zip(run_dir(conv_seq, 'l0f', False), run_dir(conv_seq, 'l0r', True))]
    rnn = jnp.stack([jnp.concatenate([f, r], axis=1) for f, r in
                     zip(run_dir(l0, 'l1f', False), run_dir(l0, 'l1r', True))], axis=0)
    g = rnn.mean(axis=0)
    attn = jnp.tanh(jnp.einsum('lbh,ah->lba', rnn, p['wl']) + p['bl'] + g @ p['wg'].T)
    attn = jnp.transpose(attn, (1, 0, 2))                     # (B, L, A)
    alpha = jax.nn.softmax(attn @ p['attn_scale'], axis=-1)   # (B, L, 1)
    rnn_bt = jnp.transpose(rnn, (1, 0, 2))                    # (B, L, 2H)
    fc_in = (alpha * rnn_bt).sum(axis=1)                      # (B, 2H)
    return (fc_in @ p['wf'].T + p['bf'])[:, 0]


if __name__ == "__main__":
    key = jax.random.PRNGKey(0)
    xkey, pkey = jax.random.split(key)
    x = jax.random.normal(xkey, (BATCH, FEATURE_DIM), jnp.float32)
    params = init_params(pkey)

    packed = pack_params(params)          # one-time packing, outside the call path
    out = jax.block_until_ready(attention_rcnn_pallas(x, packed))
    ref = reference_forward(x, params)

    assert out.shape == (BATCH,), out.shape
    assert bool(jnp.all(jnp.isfinite(out)))
    assert jnp.allclose(out, ref, atol=2e-2, rtol=2e-2), (out, ref)
    print("KERNEL_OK")
</pallas_src>

<mosaic_0001>
module attributes {stable_mosaic.version = 11 : i64} {
  func.func @attention_rcnn_kernel(%arg0: memref<8x16xf32, #tpu.memory_space<vmem>>, %arg1: memref<24x1280xf32, #tpu.memory_space<vmem>>, %arg2: memref<72x256xf32, #tpu.memory_space<vmem>>, %arg3: memref<128x256xf32, #tpu.memory_space<vmem>>, %arg4: memref<72x128xf32, #tpu.memory_space<vmem>>, %arg5: memref<8x128xf32, #tpu.memory_space<vmem>>) attributes {dimension_semantics = [], scalar_prefetch = 0 : i64, scratch_operands = 0 : i64, tpu.core_type = #tpu.core_type<tc>} {
    %c0 = arith.constant 0 : index
    %c0_0 = arith.constant 0 : index
    %0 = vector.load %arg0[%c0, %c0_0] : memref<8x16xf32, #tpu.memory_space<vmem>>, vector<8x16xf32>
    %c0_1 = arith.constant 0 : index
    %c0_2 = arith.constant 0 : index
    %1 = vector.load %arg1[%c0_1, %c0_2] : memref<24x1280xf32, #tpu.memory_space<vmem>>, vector<16x1280xf32>
    %cst = arith.constant dense<0.000000e+00> : vector<8x1280xf32>
    %2 = tpu.matmul %0, %1, %cst {dimension_numbers = #tpu.dot_dimension_numbers<[1], [0], [0], [1], [0, 0, 1, 1], [], []>} : vector<8x16xf32>, vector<16x1280xf32>, vector<8x1280xf32> -> vector<8x1280xf32>
    %c16 = arith.constant 16 : index
    %c0_3 = arith.constant 0 : index
    %3 = vector.load %arg1[%c16, %c0_3] : memref<24x1280xf32, #tpu.memory_space<vmem>>, vector<1x1280xf32>
    %4 = vector.broadcast %3 : vector<1x1280xf32> to vector<8x1280xf32>
    %5 = arith.addf %2, %4 : vector<8x1280xf32>
    %6 = tpu.iota {dimensions = array<i32: 1>} : vector<8x256xi32>
    %c64_i32 = arith.constant 64 : i32
    %c0_i32 = arith.constant 0 : i32
    %7 = arith.cmpi eq, %c64_i32, %c0_i32 : i32
    %c1_i32 = arith.constant 1 : i32
    %8 = arith.select %7, %c1_i32, %c64_i32 : i32
    %9 = vector.broadcast %8 : i32 to vector<8x256xi32>
    %10 = arith.remsi %6, %9 : vector<8x256xi32>
    %c0_i32_4 = arith.constant 0 : i32
    %11 = vector.broadcast %c0_i32_4 : i32 to vector<8x256xi32>
    %12 = arith.cmpi ne, %10, %11 : vector<8x256xi32>
    %c0_i32_5 = arith.constant 0 : i32
    %13 = vector.broadcast %c0_i32_5 : i32 to vector<8x256xi32>
    %14 = arith.cmpi slt, %10, %13 : vector<8x256xi32>
    %c0_i32_6 = arith.constant 0 : i32
    %15 = arith.cmpi slt, %8, %c0_i32_6 : i32
    %16 = vector.broadcast %15 : i1 to vector<8x256xi1>
    %17 = vector.broadcast %16 : vector<8x256xi1> to vector<8x256xi1>
    %18 = arith.xori %14, %17 : vector<8x256xi1>
    %19 = arith.andi %18, %12 : vector<8x256xi1>
    %20 = vector.broadcast %8 : i32 to vector<8x256xi32>
    %21 = arith.addi %10, %20 : vector<8x256xi32>
    %22 = arith.select %19, %21, %10 : vector<8x256xi1>, vector<8x256xi32>
    %c32_i32 = arith.constant 32 : i32
    %23 = vector.broadcast %c32_i32 : i32 to vector<8x256xi32>
    %24 = arith.cmpi slt, %22, %23 : vector<8x256xi32>
    %25 = tpu.iota {dimensions = array<i32: 1>} : vector<8x64xi32>
    %c32_i32_7 = arith.constant 32 : i32
    %26 = vector.broadcast %c32_i32_7 : i32 to vector<8x64xi32>
    %27 = arith.cmpi slt, %25, %26 : vector<8x64xi32>
    %c0_8 = arith.constant 0 : index
    %c0_9 = arith.constant 0 : index
    %28 = vector.load %arg3[%c0_8, %c0_9] : memref<128x256xf32, #tpu.memory_space<vmem>>, vector<64x256xf32>
    %cst_10 = arith.constant 0.000000e+00 : f32
    %29 = vector.broadcast %cst_10 : f32 to vector<8x64xf32>
    %cst_11 = arith.constant 0.000000e+00 : f32
    %30 = vector.broadcast %cst_11 : f32 to vector<8x64xf32>
    %31 = vector.extract_strided_slice %5 {offsets = [0, 0], sizes = [8, 256], strides = [1, 1]} : vector<8x1280xf32> to vector<8x256xf32>
    %cst_12 = arith.constant dense<0.000000e+00> : vector<8x256xf32>
    %32 = tpu.matmul %29, %28, %cst_12 {dimension_numbers = #tpu.dot_dimension_numbers<[1], [0], [0], [1], [0, 0, 1, 1], [], []>} : vector<8x64xf32>, vector<64x256xf32>, vector<8x256xf32> -> vector<8x256xf32>
    %33 = arith.addf %31, %32 : vector<8x256xf32>
    %34 = vector.extract_strided_slice %33 {offsets = [0, 0], sizes = [8, 192], strides = [1, 1]} : vector<8x256xf32> to vector<8x192xf32>
    %35 = arith.negf %34 : vector<8x192xf32>
    %36 = math.exp %35 : vector<8x192xf32>
    %cst_13 = arith.constant 1.000000e+00 : f32
    %37 = vector.broadcast %cst_13 : f32 to vector<8x192xf32>
    %38 = arith.addf %37, %36 : vector<8x192xf32>
    %39 = arith.divf %37, %38 : vector<8x192xf32>
    %40 = vector.extract_strided_slice %33 {offsets = [0, 192], sizes = [8, 64], strides = [1, 1]} : vector<8x256xf32> to vector<8x64xf32>
    %41 = math.tanh %40 : vector<8x64xf32>
    %42 = vector.extract_strided_slice %39 {offsets = [0, 0], sizes = [8, 64], strides = [1, 1]} : vector<8x192xf32> to vector<8x64xf32>
    %43 = vector.extract_strided_slice %39 {offsets = [0, 64], sizes = [8, 64], strides = [1, 1]} : vector<8x192xf32> to vector<8x64xf32>
    %44 = vector.extract_strided_slice %39 {offsets = [0, 128], sizes = [8, 64], strides = [1, 1]} : vector<8x192xf32> to vector<8x64xf32>
    %45 = arith.mulf %43, %30 : vector<8x64xf32>
    %46 = arith.mulf %42, %41 : vector<8x64xf32>
    %47 = arith.addf %45, %46 : vector<8x64xf32>
    %48 = math.tanh %47 : vector<8x64xf32>
    %49 = arith.mulf %44, %48 : vector<8x64xf32>
    %50 = vector.extract_strided_slice %5 {offsets = [0, 256], sizes = [8, 256], strides = [1, 1]} : vector<8x1280xf32> to vector<8x256xf32>
    %cst_14 = arith.constant dense<0.000000e+00> : vector<8x256xf32>
    %51 = tpu.matmul %49, %28, %cst_14 {dimension_numbers = #tpu.dot_dimension_numbers<[1], [0], [0], [1], [0, 0, 1, 1], [], []>} : vector<8x64xf32>, vector<64x256xf32>, vector<8x256xf32> -> vector<8x256xf32>
    %52 = arith.addf %50, %51 : vector<8x256xf32>
    %53 = vector.extract_strided_slice %52 {offsets = [0, 0], sizes = [8, 192], strides = [1, 1]} : vector<8x256xf32> to vector<8x192xf32>
    %54 = arith.negf %53 : vector<8x192xf32>
    %55 = math.exp %54 : vector<8x192xf32>
    %cst_15 = arith.constant 1.000000e+00 : f32
    %56 = vector.broadcast %cst_15 : f32 to vector<8x192xf32>
    %57 = arith.addf %56, %55 : vector<8x192xf32>
    %58 = arith.divf %56, %57 : vector<8x192xf32>
    %59 = vector.extract_strided_slice %52 {offsets = [0, 192], sizes = [8, 64], strides = [1, 1]} : vector<8x256xf32> to vector<8x64xf32>
    %60 = math.tanh %59 : vector<8x64xf32>
    %61 = vector.extract_strided_slice %58 {offsets = [0, 0], sizes = [8, 64], strides = [1, 1]} : vector<8x192xf32> to vector<8x64xf32>
    %62 = vector.extract_strided_slice %58 {offsets = [0, 64], sizes = [8, 64], strides = [1, 1]} : vector<8x192xf32> to vector<8x64xf32>
    %63 = vector.extract_strided_slice %58 {offsets = [0, 128], sizes = [8, 64], strides = [1, 1]} : vector<8x192xf32> to vector<8x64xf32>
    %64 = arith.mulf %62, %47 : vector<8x64xf32>
    %65 = arith.mulf %61, %60 : vector<8x64xf32>
    %66 = arith.addf %64, %65 : vector<8x64xf32>
    %67 = math.tanh %66 : vector<8x64xf32>
    %68 = arith.mulf %63, %67 : vector<8x64xf32>
    %69 = vector.extract_strided_slice %5 {offsets = [0, 512], sizes = [8, 256], strides = [1, 1]} : vector<8x1280xf32> to vector<8x256xf32>
    %cst_16 = arith.constant dense<0.000000e+00> : vector<8x256xf32>
    %70 = tpu.matmul %68, %28, %cst_16 {dimension_numbers = #tpu.dot_dimension_numbers<[1], [0], [0], [1], [0, 0, 1, 1], [], []>} : vector<8x64xf32>, vector<64x256xf32>, vector<8x256xf32> -> vector<8x256xf32>
    %71 = arith.addf %69, %70 : vector<8x256xf32>
    %72 = vector.extract_strided_slice %71 {offsets = [0, 0], sizes = [8, 192], strides = [1, 1]} : vector<8x256xf32> to vector<8x192xf32>
    %73 = arith.negf %72 : vector<8x192xf32>
    %74 = math.exp %73 : vector<8x192xf32>
    %cst_17 = arith.constant 1.000000e+00 : f32
    %75 = vector.broadcast %cst_17 : f32 to vector<8x192xf32>
    %76 = arith.addf %75, %74 : vector<8x192xf32>
    %77 = arith.divf %75, %76 : vector<8x192xf32>
    %78 = vector.extract_strided_slice %71 {offsets = [0, 192], sizes = [8, 64], strides = [1, 1]} : vector<8x256xf32> to vector<8x64xf32>
    %79 = math.tanh %78 : vector<8x64xf32>
    %80 = vector.extract_strided_slice %77 {offsets = [0, 0], sizes = [8, 64], strides = [1, 1]} : vector<8x192xf32> to vector<8x64xf32>
    %81 = vector.extract_strided_slice %77 {offsets = [0, 64], sizes = [8, 64], strides = [1, 1]} : vector<8x192xf32> to vector<8x64xf32>
    %82 = vector.extract_strided_slice %77 {offsets = [0, 128], sizes = [8, 64], strides = [1, 1]} : vector<8x192xf32> to vector<8x64xf32>
    %83 = arith.mulf %81, %66 : vector<8x64xf32>
    %84 = arith.mulf %80, %79 : vector<8x64xf32>
    %85 = arith.addf %83, %84 : vector<8x64xf32>
    %86 = math.tanh %85 : vector<8x64xf32>
    %87 = arith.mulf %82, %86 : vector<8x64xf32>
    %88 = vector.extract_strided_slice %5 {offsets = [0, 768], sizes = [8, 256], strides = [1, 1]} : vector<8x1280xf32> to vector<8x256xf32>
    %cst_18 = arith.constant dense<0.000000e+00> : vector<8x256xf32>
    %89 = tpu.matmul %87, %28, %cst_18 {dimension_numbers = #tpu.dot_dimension_numbers<[1], [0], [0], [1], [0, 0, 1, 1], [], []>} : vector<8x64xf32>, vector<64x256xf32>, vector<8x256xf32> -> vector<8x256xf32>
    %90 = arith.addf %88, %89 : vector<8x256xf32>
    %91 = vector.extract_strided_slice %90 {offsets = [0, 0], sizes = [8, 192], strides = [1, 1]} : vector<8x256xf32> to vector<8x192xf32>
    %92 = arith.negf %91 : vector<8x192xf32>
    %93 = math.exp %92 : vector<8x192xf32>
    %cst_19 = arith.constant 1.000000e+00 : f32
    %94 = vector.broadcast %cst_19 : f32 to vector<8x192xf32>
    %95 = arith.addf %94, %93 : vector<8x192xf32>
    %96 = arith.divf %94, %95 : vector<8x192xf32>
    %97 = vector.extract_strided_slice %90 {offsets = [0, 192], sizes = [8, 64], strides = [1, 1]} : vector<8x256xf32> to vector<8x64xf32>
    %98 = math.tanh %97 : vector<8x64xf32>
    %99 = vector.extract_strided_slice %96 {offsets = [0, 0], sizes = [8, 64], strides = [1, 1]} : vector<8x192xf32> to vector<8x64xf32>
    %100 = vector.extract_strided_slice %96 {offsets = [0, 64], sizes = [8, 64], strides = [1, 1]} : vector<8x192xf32> to vector<8x64xf32>
    %101 = vector.extract_strided_slice %96 {offsets = [0, 128], sizes = [8, 64], strides = [1, 1]} : vector<8x192xf32> to vector<8x64xf32>
    %102 = arith.mulf %100, %85 : vector<8x64xf32>
    %103 = arith.mulf %99, %98 : vector<8x64xf32>
    %104 = arith.addf %102, %103 : vector<8x64xf32>
    %105 = math.tanh %104 : vector<8x64xf32>
    %106 = arith.mulf %101, %105 : vector<8x64xf32>
    %107 = vector.extract_strided_slice %5 {offsets = [0, 1024], sizes = [8, 256], strides = [1, 1]} : vector<8x1280xf32> to vector<8x256xf32>
    %cst_20 = arith.constant dense<0.000000e+00> : vector<8x256xf32>
    %108 = tpu.matmul %106, %28, %cst_20 {dimension_numbers = #tpu.dot_dimension_numbers<[1], [0], [0], [1], [0, 0, 1, 1], [], []>} : vector<8x64xf32>, vector<64x256xf32>, vector<8x256xf32> -> vector<8x256xf32>
    %109 = arith.addf %107, %108 : vector<8x256xf32>
    %110 = vector.extract_strided_slice %109 {offsets = [0, 0], sizes = [8, 192], strides = [1, 1]} : vector<8x256xf32> to vector<8x192xf32>
    %111 = arith.negf %110 : vector<8x192xf32>
    %112 = math.exp %111 : vector<8x192xf32>
    %cst_21 = arith.constant 1.000000e+00 : f32
    %113 = vector.broadcast %cst_21 : f32 to vector<8x192xf32>
    %114 = arith.addf %113, %112 : vector<8x192xf32>
    %115 = arith.divf %113, %114 : vector<8x192xf32>
    %116 = vector.extract_strided_slice %109 {offsets = [0, 192], sizes = [8, 64], strides = [1, 1]} : vector<8x256xf32> to vector<8x64xf32>
    %117 = math.tanh %116 : vector<8x64xf32>
    %118 = vector.extract_strided_slice %115 {offsets = [0, 0], sizes = [8, 64], strides = [1, 1]} : vector<8x192xf32> to vector<8x64xf32>
    %119 = vector.extract_strided_slice %115 {offsets = [0, 64], sizes = [8, 64], strides = [1, 1]} : vector<8x192xf32> to vector<8x64xf32>
    %120 = vector.extract_strided_slice %115 {offsets = [0, 128], sizes = [8, 64], strides = [1, 1]} : vector<8x192xf32> to vector<8x64xf32>
    %121 = arith.mulf %119, %104 : vector<8x64xf32>
    %122 = arith.mulf %118, %117 : vector<8x64xf32>
    %123 = arith.addf %121, %122 : vector<8x64xf32>
    %124 = math.tanh %123 : vector<8x64xf32>
    %125 = arith.mulf %120, %124 : vector<8x64xf32>
    %126 = arith.select %27, %49, %125 : vector<8x64xi1>, vector<8x64xf32>
    %127 = arith.select %27, %68, %106 : vector<8x64xi1>, vector<8x64xf32>
    %128 = arith.select %27, %87, %87 : vector<8x64xi1>, vector<8x64xf32>
    %129 = arith.select %27, %106, %68 : vector<8x64xi1>, vector<8x64xf32>
    %130 = arith.select %27, %125, %49 : vector<8x64xi1>, vector<8x64xf32>
    %131 = tpu.concatenate %126, %127, %128, %129, %130 in 0 : vector<8x64xf32>, vector<8x64xf32>, vector<8x64xf32>, vector<8x64xf32>, vector<8x64xf32> -> vector<40x64xf32>
    %c0_22 = arith.constant 0 : index
    %c0_23 = arith.constant 0 : index
    %132 = vector.load %arg2[%c0_22, %c0_23] : memref<72x256xf32, #tpu.memory_space<vmem>>, vector<64x256xf32>
    %cst_24 = arith.constant dense<0.000000e+00> : vector<40x256xf32>
    %133 = tpu.matmul %131, %132, %cst_24 {dimension_numbers = #tpu.dot_dimension_numbers<[1], [0], [0], [1], [0, 0, 1, 1], [], []>} : vector<40x64xf32>, vector<64x256xf32>, vector<40x256xf32> -> vector<40x256xf32>
    %c64 = arith.constant 64 : index
    %c0_25 = arith.constant 0 : index
    %134 = vector.load %arg2[%c64, %c0_25] : memref<72x256xf32, #tpu.memory_space<vmem>>, vector<1x256xf32>
    %135 = vector.broadcast %134 : vector<1x256xf32> to vector<40x256xf32>
    %136 = arith.addf %133, %135 : vector<40x256xf32>
    %c64_26 = arith.constant 64 : index
    %c0_27 = arith.constant 0 : index
    %137 = vector.load %arg3[%c64_26, %c0_27] : memref<128x256xf32, #tpu.memory_space<vmem>>, vector<64x256xf32>
    %cst_28 = arith.constant 0.000000e+00 : f32
    %138 = vector.broadcast %cst_28 : f32 to vector<8x64xf32>
    %cst_29 = arith.constant 0.000000e+00 : f32
    %139 = vector.broadcast %cst_29 : f32 to vector<8x64xf32>
    %cst_30 = arith.constant 0.000000e+00 : f32
    %140 = vector.broadcast %cst_30 : f32 to vector<8x64xf32>
    %141 = vector.extract_strided_slice %136 {offsets = [0, 0], sizes = [8, 256], strides = [1, 1]} : vector<40x256xf32> to vector<8x256xf32>
    %142 = vector.extract_strided_slice %136 {offsets = [32, 0], sizes = [8, 256], strides = [1, 1]} : vector<40x256xf32> to vector<8x256xf32>
    %143 = arith.select %24, %141, %142 : vector<8x256xi1>, vector<8x256xf32>
    %cst_31 = arith.constant dense<0.000000e+00> : vector<8x256xf32>
    %144 = tpu.matmul %138, %137, %cst_31 {dimension_numbers = #tpu.dot_dimension_numbers<[1], [0], [0], [1], [0, 0, 1, 1], [], []>} : vector<8x64xf32>, vector<64x256xf32>, vector<8x256xf32> -> vector<8x256xf32>
    %145 = arith.addf %143, %144 : vector<8x256xf32>
    %146 = vector.extract_strided_slice %145 {offsets = [0, 0], sizes = [8, 192], strides = [1, 1]} : vector<8x256xf32> to vector<8x192xf32>
    %147 = arith.negf %146 : vector<8x192xf32>
    %148 = math.exp %147 : vector<8x192xf32>
    %cst_32 = arith.constant 1.000000e+00 : f32
    %149 = vector.broadcast %cst_32 : f32 to vector<8x192xf32>
    %150 = arith.addf %149, %148 : vector<8x192xf32>
    %151 = arith.divf %149, %150 : vector<8x192xf32>
    %152 = vector.extract_strided_slice %145 {offsets = [0, 192], sizes = [8, 64], strides = [1, 1]} : vector<8x256xf32> to vector<8x64xf32>
    %153 = math.tanh %152 : vector<8x64xf32>
    %154 = vector.extract_strided_slice %151 {offsets = [0, 0], sizes = [8, 64], strides = [1, 1]} : vector<8x192xf32> to vector<8x64xf32>
    %155 = vector.extract_strided_slice %151 {offsets = [0, 64], sizes = [8, 64], strides = [1, 1]} : vector<8x192xf32> to vector<8x64xf32>
    %156 = vector.extract_strided_slice %151 {offsets = [0, 128], sizes = [8, 64], strides = [1, 1]} : vector<8x192xf32> to vector<8x64xf32>
    %157 = arith.mulf %155, %139 : vector<8x64xf32>
    %158 = arith.mulf %154, %153 : vector<8x64xf32>
    %159 = arith.addf %157, %158 : vector<8x64xf32>
    %160 = math.tanh %159 : vector<8x64xf32>
    %161 = arith.mulf %156, %160 : vector<8x64xf32>
    %162 = arith.addf %140, %161 : vector<8x64xf32>
    %163 = vector.extract_strided_slice %136 {offsets = [8, 0], sizes = [8, 256], strides = [1, 1]} : vector<40x256xf32> to vector<8x256xf32>
    %164 = vector.extract_strided_slice %136 {offsets = [24, 0], sizes = [8, 256], strides = [1, 1]} : vector<40x256xf32> to vector<8x256xf32>
    %165 = arith.select %24, %163, %164 : vector<8x256xi1>, vector<8x256xf32>
    %cst_33 = arith.constant dense<0.000000e+00> : vector<8x256xf32>
    %166 = tpu.matmul %161, %137, %cst_33 {dimension_numbers = #tpu.dot_dimension_numbers<[1], [0], [0], [1], [0, 0, 1, 1], [], []>} : vector<8x64xf32>, vector<64x256xf32>, vector<8x256xf32> -> vector<8x256xf32>
    %167 = arith.addf %165, %166 : vector<8x256xf32>
    %168 = vector.extract_strided_slice %167 {offsets = [0, 0], sizes = [8, 192], strides = [1, 1]} : vector<8x256xf32> to vector<8x192xf32>
    %169 = arith.negf %168 : vector<8x192xf32>
    %170 = math.exp %169 : vector<8x192xf32>
    %cst_34 = arith.constant 1.000000e+00 : f32
    %171 = vector.broadcast %cst_34 : f32 to vector<8x192xf32>
    %172 = arith.addf %171, %170 : vector<8x192xf32>
    %173 = arith.divf %171, %172 : vector<8x192xf32>
    %174 = vector.extract_strided_slice %167 {offsets = [0, 192], sizes = [8, 64], strides = [1, 1]} : vector<8x256xf32> to vector<8x64xf32>
    %175 = math.tanh %174 : vector<8x64xf32>
    %176 = vector.extract_strided_slice %173 {offsets = [0, 0], sizes = [8, 64], strides = [1, 1]} : vector<8x192xf32> to vector<8x64xf32>
    %177 = vector.extract_strided_slice %173 {offsets = [0, 64], sizes = [8, 64], strides = [1, 1]} : vector<8x192xf32> to vector<8x64xf32>
    %178 = vector.extract_strided_slice %173 {offsets = [0, 128], sizes = [8, 64], strides = [1, 1]} : vector<8x192xf32> to vector<8x64xf32>
    %179 = arith.mulf %177, %159 : vector<8x64xf32>
    %180 = arith.mulf %176, %175 : vector<8x64xf32>
    %181 = arith.addf %179, %180 : vector<8x64xf32>
    %182 = math.tanh %181 : vector<8x64xf32>
    %183 = arith.mulf %178, %182 : vector<8x64xf32>
    %184 = arith.addf %162, %183 : vector<8x64xf32>
    %185 = vector.extract_strided_slice %136 {offsets = [16, 0], sizes = [8, 256], strides = [1, 1]} : vector<40x256xf32> to vector<8x256xf32>
    %186 = vector.extract_strided_slice %136 {offsets = [16, 0], sizes = [8, 256], strides = [1, 1]} : vector<40x256xf32> to vector<8x256xf32>
    %187 = arith.select %24, %185, %186 : vector<8x256xi1>, vector<8x256xf32>
    %cst_35 = arith.constant dense<0.000000e+00> : vector<8x256xf32>
    %188 = tpu.matmul %183, %137, %cst_35 {dimension_numbers = #tpu.dot_dimension_numbers<[1], [0], [0], [1], [0, 0, 1, 1], [], []>} : vector<8x64xf32>, vector<64x256xf32>, vector<8x256xf32> -> vector<8x256xf32>
    %189 = arith.addf %187, %188 : vector<8x256xf32>
    %190 = vector.extract_strided_slice %189 {offsets = [0, 0], sizes = [8, 192], strides = [1, 1]} : vector<8x256xf32> to vector<8x192xf32>
    %191 = arith.negf %190 : vector<8x192xf32>
    %192 = math.exp %191 : vector<8x192xf32>
    %cst_36 = arith.constant 1.000000e+00 : f32
    %193 = vector.broadcast %cst_36 : f32 to vector<8x192xf32>
    %194 = arith.addf %193, %192 : vector<8x192xf32>
    %195 = arith.divf %193, %194 : vector<8x192xf32>
    %196 = vector.extract_strided_slice %189 {offsets = [0, 192], sizes = [8, 64], strides = [1, 1]} : vector<8x256xf32> to vector<8x64xf32>
    %197 = math.tanh %196 : vector<8x64xf32>
    %198 = vector.extract_strided_slice %195 {offsets = [0, 0], sizes = [8, 64], strides = [1, 1]} : vector<8x192xf32> to vector<8x64xf32>
    %199 = vector.extract_strided_slice %195 {offsets = [0, 64], sizes = [8, 64], strides = [1, 1]} : vector<8x192xf32> to vector<8x64xf32>
    %200 = vector.extract_strided_slice %195 {offsets = [0, 128], sizes = [8, 64], strides = [1, 1]} : vector<8x192xf32> to vector<8x64xf32>
    %201 = arith.mulf %199, %181 : vector<8x64xf32>
    %202 = arith.mulf %198, %197 : vector<8x64xf32>
    %203 = arith.addf %201, %202 : vector<8x64xf32>
    %204 = math.tanh %203 : vector<8x64xf32>
    %205 = arith.mulf %200, %204 : vector<8x64xf32>
    %206 = arith.addf %184, %205 : vector<8x64xf32>
    %207 = vector.extract_strided_slice %136 {offsets = [24, 0], sizes = [8, 256], strides = [1, 1]} : vector<40x256xf32> to vector<8x256xf32>
    %208 = vector.extract_strided_slice %136 {offsets = [8, 0], sizes = [8, 256], strides = [1, 1]} : vector<40x256xf32> to vector<8x256xf32>
    %209 = arith.select %24, %207, %208 : vector<8x256xi1>, vector<8x256xf32>
    %cst_37 = arith.constant dense<0.000000e+00> : vector<8x256xf32>
    %210 = tpu.matmul %205, %137, %cst_37 {dimension_numbers = #tpu.dot_dimension_numbers<[1], [0], [0], [1], [0, 0, 1, 1], [], []>} : vector<8x64xf32>, vector<64x256xf32>, vector<8x256xf32> -> vector<8x256xf32>
    %211 = arith.addf %209, %210 : vector<8x256xf32>
    %212 = vector.extract_strided_slice %211 {offsets = [0, 0], sizes = [8, 192], strides = [1, 1]} : vector<8x256xf32> to vector<8x192xf32>
    %213 = arith.negf %212 : vector<8x192xf32>
    %214 = math.exp %213 : vector<8x192xf32>
    %cst_38 = arith.constant 1.000000e+00 : f32
    %215 = vector.broadcast %cst_38 : f32 to vector<8x192xf32>
    %216 = arith.addf %215, %214 : vector<8x192xf32>
    %217 = arith.divf %215, %216 : vector<8x192xf32>
    %218 = vector.extract_strided_slice %211 {offsets = [0, 192], sizes = [8, 64], strides = [1, 1]} : vector<8x256xf32> to vector<8x64xf32>
    %219 = math.tanh %218 : vector<8x64xf32>
    %220 = vector.extract_strided_slice %217 {offsets = [0, 0], sizes = [8, 64], strides = [1, 1]} : vector<8x192xf32> to vector<8x64xf32>
    %221 = vector.extract_strided_slice %217 {offsets = [0, 64], sizes = [8, 64], strides = [1, 1]} : vector<8x192xf32> to vector<8x64xf32>
    %222 = vector.extract_strided_slice %217 {offsets = [0, 128], sizes = [8, 64], strides = [1, 1]} : vector<8x192xf32> to vector<8x64xf32>
    %223 = arith.mulf %221, %203 : vector<8x64xf32>
    %224 = arith.mulf %220, %219 : vector<8x64xf32>
    %225 = arith.addf %223, %224 : vector<8x64xf32>
    %226 = math.tanh %225 : vector<8x64xf32>
    %227 = arith.mulf %222, %226 : vector<8x64xf32>
    %228 = arith.addf %206, %227 : vector<8x64xf32>
    %229 = vector.extract_strided_slice %136 {offsets = [32, 0], sizes = [8, 256], strides = [1, 1]} : vector<40x256xf32> to vector<8x256xf32>
    %230 = vector.extract_strided_slice %136 {offsets = [0, 0], sizes = [8, 256], strides = [1, 1]} : vector<40x256xf32> to vector<8x256xf32>
    %231 = arith.select %24, %229, %230 : vector<8x256xi1>, vector<8x256xf32>
    %cst_39 = arith.constant dense<0.000000e+00> : vector<8x256xf32>
    %232 = tpu.matmul %227, %137, %cst_39 {dimension_numbers = #tpu.dot_dimension_numbers<[1], [0], [0], [1], [0, 0, 1, 1], [], []>} : vector<8x64xf32>, vector<64x256xf32>, vector<8x256xf32> -> vector<8x256xf32>
    %233 = arith.addf %231, %232 : vector<8x256xf32>
    %234 = vector.extract_strided_slice %233 {offsets = [0, 0], sizes = [8, 192], strides = [1, 1]} : vector<8x256xf32> to vector<8x192xf32>
    %235 = arith.negf %234 : vector<8x192xf32>
    %236 = math.exp %235 : vector<8x192xf32>
    %cst_40 = arith.constant 1.000000e+00 : f32
    %237 = vector.broadcast %cst_40 : f32 to vector<8x192xf32>
    %238 = arith.addf %237, %236 : vector<8x192xf32>
    %239 = arith.divf %237, %238 : vector<8x192xf32>
    %240 = vector.extract_strided_slice %233 {offsets = [0, 192], sizes = [8, 64], strides = [1, 1]} : vector<8x256xf32> to vector<8x64xf32>
    %241 = math.tanh %240 : vector<8x64xf32>
    %242 = vector.extract_strided_slice %239 {offsets = [0, 0], sizes = [8, 64], strides = [1, 1]} : vector<8x192xf32> to vector<8x64xf32>
    %243 = vector.extract_strided_slice %239 {offsets = [0, 64], sizes = [8, 64], strides = [1, 1]} : vector<8x192xf32> to vector<8x64xf32>
    %244 = vector.extract_strided_slice %239 {offsets = [0, 128], sizes = [8, 64], strides = [1, 1]} : vector<8x192xf32> to vector<8x64xf32>
    %245 = arith.mulf %243, %225 : vector<8x64xf32>
    %246 = arith.mulf %242, %241 : vector<8x64xf32>
    %247 = arith.addf %245, %246 : vector<8x64xf32>
    %248 = math.tanh %247 : vector<8x64xf32>
    %249 = arith.mulf %244, %248 : vector<8x64xf32>
    %250 = arith.addf %228, %249 : vector<8x64xf32>
    %c0_41 = arith.constant 0 : index
    %c0_42 = arith.constant 0 : index
    %251 = vector.load %arg4[%c0_41, %c0_42] : memref<72x128xf32, #tpu.memory_space<vmem>>, vector<64x128xf32>
    %cst_43 = arith.constant dense<0.000000e+00> : vector<8x128xf32>
    %252 = tpu.matmul %250, %251, %cst_43 {dimension_numbers = #tpu.dot_dimension_numbers<[1], [0], [0], [1], [0, 0, 1, 1], [], []>} : vector<8x64xf32>, vector<64x128xf32>, vector<8x128xf32> -> vector<8x128xf32>
    %c64_44 = arith.constant 64 : index
    %c0_45 = arith.constant 0 : index
    %253 = vector.load %arg4[%c64_44, %c0_45] : memref<72x128xf32, #tpu.memory_space<vmem>>, vector<1x128xf32>
    %254 = vector.broadcast %253 : vector<1x128xf32> to vector<8x128xf32>
    %255 = arith.addf %252, %254 : vector<8x128xf32>
    %c0_46 = arith.constant 0 : index
    %c0_47 = arith.constant 0 : index
    %256 = vector.load %arg5[%c0_46, %c0_47] : memref<8x128xf32, #tpu.memory_space<vmem>>, vector<8x128xf32>
    tpu.vector_store %arg5[%c0_46, %c0_47], %255 {strides = array<i32>} : memref<8x128xf32, #tpu.memory_space<vmem>>, vector<8x128xf32>,
    return
  }
}

</mosaic_0001>

<bundles_post_ra>
// kernel: _run_packed.1
= control target key start
LH: loop header
LB: loop body
LE: loop exit
PB: predicated region body
PF: predicated region fallthrough
CT: control target
= control target key end

     0   :  { %10 = vsyncpa [#allocation3], 0  ;;  %s2722_s0 = inlined_call_operand.vmem [shape: f32[8,16], index: 0, kind: input, shape index: {}]   ;;  %s2723_s1 = inlined_call_operand.hbm [shape: f32[24,1280], index: 1, kind: input, shape index: {}]   ;;  %s2724_s2 = inlined_call_operand.hbm [shape: f32[72,256], index: 2, kind: input, shape index: {}]   ;;  %s2725_s3 = inlined_call_operand.hbm [shape: f32[128,256], index: 3, kind: input, shape index: {}]   ;;  %s2726_s4 = inlined_call_operand.hbm [shape: f32[72,128], index: 4, kind: input, shape index: {}]   ;;  %s2727_s5 = inlined_call_operand.vmem [shape: f32[8,128], index: 5, kind: output, shape index: {}]  }
   0x1   :  { %11 = vsyncpa [#allocation5], 0 }
   0x2   :  { %12 = vsyncpa [#allocation8], 0  ;;  %s2167_s18 = smov [#allocation4]  }
   0x3   :  { %s32_s19 = sshll.u32 %s2167_s18, 4  ;;  %s33_s19 = int_to_ptr.vmem [resolvable:$true] %s32_s19 }
   0x4   :  { %s2089_s20 = scalar_lea.vmem %s33_s19, 2304  ;;  %p2094_p1 = scmp.lt.s32.totalorder %s33_s19, %s33_s19 }
   0x5   :  { %p2090_p0 = scmp.ne.s32.totalorder %s33_s19, %s2089_s20  ;;  %p2095_p2 = scmp.lt.s32.totalorder %s2089_s20, %s2089_s20 }
   0x7   :  { %p2096_p3 = por %p2095_p2, %p2094_p1 }
   0x9   :  { %p2097_p4 = pnand %p2096_p3, %p2090_p0 }
   0xb   :  { %2100 = shalt.err (!%p2097_p4)
}
   0xc   :  { %s2168_s21 = smov 256   ;;  %s2169_s22 = smov 16  }
   0xd   :  { %38 = dma.hbm_to_vmem [thread:$0]  %s2724_s2, 2304, %s33_s19, [#allocation5], %s2168_s21, %s2168_s21, %s2169_s22  }
   0xe   :  { %s2170_s25 = smov [#allocation2]  }
   0xf   :  { %s20_s26 = sshll.u32 %s2170_s25, 4  ;;  %s21_s26 = int_to_ptr.vmem [resolvable:$true] %s20_s26 }
  0x10   :  { %s2109_s27 = scalar_lea.vmem %s21_s26, 3840  ;;  %p2114_p6 = scmp.lt.s32.totalorder %s21_s26, %s21_s26 }
  0x11   :  { %p2110_p5 = scmp.ne.s32.totalorder %s21_s26, %s2109_s27  ;;  %p2115_p7 = scmp.lt.s32.totalorder %s2109_s27, %s2109_s27 }
  0x13   :  { %p2116_p8 = por %p2115_p7, %p2114_p6 }
  0x15   :  { %p2117_p9 = pnand %p2116_p8, %p2110_p5 }
  0x17   :  { %2120 = shalt.err (!%p2117_p9)
}
  0x18   :  { %s2171_s28 = smov 1280   ;;  %s2172_s29 = smov 80  }
  0x19   :  { %26 = dma.hbm_to_vmem [thread:$0]  %s2723_s1, 3840, %s21_s26, [#allocation3], %s2171_s28, %s2171_s28, %s2172_s29  }
  0x1a   :  { %s2173_s7 = smov [#allocation6]   ;;  %s2174_s9 = smov [#allocation7]  }
  0x1b   :  { %s44_s8 = sshll.u32 %s2173_s7, 4  ;;  %s56_s2 = sshll.u32 %s2174_s9, 4  ;;  %s45_s8 = int_to_ptr.vmem [resolvable:$true] %s44_s8  ;;  %s57_s2 = int_to_ptr.vmem [resolvable:$true] %s56_s2 }
  0x1c   :  { %s2129_s10 = scalar_lea.vmem %s45_s8, 4096  ;;  %p2134_p11 = scmp.lt.s32.totalorder %s45_s8, %s45_s8 }
  0x1d   :  { %p2130_p10 = scmp.ne.s32.totalorder %s45_s8, %s2129_s10  ;;  %p2135_p12 = scmp.lt.s32.totalorder %s2129_s10, %s2129_s10 }
  0x1f   :  { %p2136_p13 = por %p2135_p12, %p2134_p11 }
  0x21   :  { %p2137_p0 = pnand %p2136_p13, %p2130_p10 }
  0x23   :  { %2140 = shalt.err (!%p2137_p0)
}
  0x24   :  { %50 = dma.hbm_to_vmem [thread:$0]  %s2725_s3, 4096, %s45_s8, [#allocation5], %s2168_s21, %s2168_s21, %s2169_s22  }
  0x25   :  { %s2149_s1 = scalar_lea.vmem %s57_s2, 1152  ;;  %p2154_p2 = scmp.lt.s32.totalorder %s57_s2, %s57_s2 }
  0x26   :  { %p2150_p1 = scmp.ne.s32.totalorder %s57_s2, %s2149_s1  ;;  %p2155_p3 = scmp.lt.s32.totalorder %s2149_s1, %s2149_s1 }
  0x28   :  { %p2156_p4 = por %p2155_p3, %p2154_p2 }
  0x2a   :  { %p2157_p5 = pnand %p2156_p4, %p2150_p1 }
  0x2c   :  { %2160 = shalt.err (!%p2157_p5)
}
  0x2d   :  { %s2175_s13 = smov 128   ;;  %s2176_s14 = smov 8  }
  0x2e   :  { %62 = dma.hbm_to_vmem [thread:$0]  %s2726_s4, 1152, %s57_s2, [#allocation8], %s2175_s13, %s2175_s13, %s2176_s14  }
  0x2f   :  { %2161 = dma.done.wait [#allocation3], 3840  }
  0x30   :  { %2162 = vsyncadd [#allocation3], 4294963456 }
  0x31   :  { %2163 = dma.done.wait [#allocation5], 6400  }
  0x32   :  { %2164 = vsyncadd [#allocation5], 4294960896 }
  0x33   :  { %2165 = dma.done.wait [#allocation8], 1152  }
  0x34   :  { %2166 = vsyncadd [#allocation8], 4294966144  ;;  %v2177_v0 = vmov 0.0   ;;  %v87_v1 = vld [vmem:[#allocation2 + $0x58] sm:$0xff]  ;;  %v86_v2 = vld [vmem:[#allocation2 + $0x50] sm:$0xff]  ;;  %vm154_vm0 = vcmask 130048   ;;  %v104_v32 = vlaneseq }
  0x35   :  { %222 = vmatprep.mubr.f32.mxu1 %v2177_v0  ;;  %364 = vmatprep.mubr.f32.mxu0 %v2177_v0  ;;  %v77_v3 = vld [vmem:[#allocation2 + $0x8] sm:$0xff]  ;;  %v76_v4 = vld [vmem:[#allocation2] sm:$0xff]  ;;  %v79_v8 = vld [vmem:[#allocation2 + $0x18] sm:$0xff]  ;;  %vm559_vm1 = vcmask 523264   ;;  %vm2179_vm5 = vmmov 0  }
  0x36   :  { %186 = vmatprep.subr.mxu1 %v87_v1  ;;  %v2233_v5 = vld [vmem:[%s2722_s0] sm:$0xff]  ;;  %v89_v6 = vld [vmem:[#allocation2 + $0x68] sm:$0xff]  ;;  %v78_v9 = vld [vmem:[#allocation2 + $0x10] sm:$0xff]  ;;  %v2314_v34 = vshrl.u32 %v104_v32, 7  ;;  %s2178_s0 = smov 64  }
  0x37   :  { %187 = vmatpush1.msra.mxu1 %v86_v2  ;;  %v88_v7 = vld [vmem:[#allocation2 + $0x60] sm:$0xff]  ;;  %v93_v10 = vld [vmem:[#allocation2 + $0x88] sm:$0xff]  ;;  %v83_v12 = vld [vmem:[#allocation2 + $0x38] sm:$0xff] }
  0x38   :  { %188 = vmatprep.subr.mxu1 %v77_v3  ;;  %v92_v11 = vld [vmem:[#allocation2 + $0x80] sm:$0xff]  ;;  %v82_v13 = vld [vmem:[#allocation2 + $0x30] sm:$0xff]  ;;  %v2241_v14 = vld [vmem:[#allocation6 + $0x78] sm:$0xff]  ;;  %v2321_v39 = vsub.s32 0, %v2314_v34  ;;  %v2324_v40 = vsub.s32 1, %v2314_v34 }
  0x39   :  { %189 = vmatpush1.msra.mxu1 %v76_v4  ;;  %v2243_v15 = vld [vmem:[#allocation6 + $0x70] sm:$0xff]  ;;  %v2245_v16 = vld [vmem:[#allocation6 + $0x68] sm:$0xff]  ;;  %v2250_v17 = vld [vmem:[#allocation6 + $0x60] sm:$0xff] }
  0x3a   :  { %1880 = vmatmul.mubr.msk.f32.vlgmr.msra.gmra.mxu1 %vm154_vm0, %v2233_v5  ;;  %257 = vmatprep.subr.mxu1 %v89_v6  ;;  %v2253_v18 = vld [vmem:[#allocation6 + $0x58] sm:$0xff]  ;;  %v2257_v19 = vld [vmem:[#allocation6 + $0x50] sm:$0xff]  ;;  %v2260_v20 = vld [vmem:[#allocation6 + $0x48] sm:$0xff] }
  0x3b   :  { %258 = vmatpush1.msra.mxu1 %v88_v7  ;;  %293 = vmatprep.mubr.f32.mxu1 %v2177_v0  ;;  %v2263_v21 = vld [vmem:[#allocation6 + $0x40] sm:$0xff]  ;;  %v2266_v22 = vld [vmem:[#allocation6 + $0x38] sm:$0xff]  ;;  %v2269_v23 = vld [vmem:[#allocation6 + $0x30] sm:$0xff] }
  0x3c   :  { %259 = vmatprep.subr.mxu1 %v79_v8  ;;  %v2272_v24 = vld [vmem:[#allocation6 + $0x28] sm:$0xff]  ;;  %v2275_v25 = vld [vmem:[#allocation6 + $0x20] sm:$0xff]  ;;  %v2278_v26 = vld [vmem:[#allocation6 + $0x18] sm:$0xff] }
  0x3d   :  { %260 = vmatpush1.msra.mxu1 %v78_v9  ;;  %v2281_v27 = vld [vmem:[#allocation6 + $0x10] sm:$0xff]  ;;  %v2284_v28 = vld [vmem:[#allocation6 + $0x8] sm:$0xff]  ;;  %v2287_v29 = vld [vmem:[#allocation6] sm:$0xff] }
  0x3e   :  { %1881 = vmatmul.mubr.msk.f32.vlgmr.msra.gmra.mxu1 %vm154_vm0, %v2233_v5  ;;  %399 = vmatprep.subr.mxu1 %v93_v10  ;;  %v97_v35 = vld [vmem:[#allocation2 + $0xa0] ss:$8 sm:$0xf] }
  0x3f   :  { %400 = vmatpush1.msra.mxu1 %v92_v11  ;;  %435 = vmatprep.mubr.f32.mxu1 %v2177_v0  ;;  %v98_v36 = vld [vmem:[#allocation2 + $0xa0] ss:$8 sm:$0xf0] }
  0x40   :  { %401 = vmatprep.subr.mxu1 %v83_v12  ;;  %v2318_v38 = vor.u32 %v98_v36, %v97_v35  ;;  %v91_v58 = vld [vmem:[#allocation2 + $0x78] sm:$0xff]  ;;  %v90_v59 = vld [vmem:[#allocation2 + $0x70] sm:$0xff]  ;;  %v81_v60 = vld [vmem:[#allocation2 + $0x28] sm:$0xff] }
  0x41   :  { %402 = vmatpush1.msra.mxu1 %v82_v13  ;;  %328 = vmatprep.subr.mxu0 %v91_v58  ;;  %v80_v61 = vld [vmem:[#allocation2 + $0x20] sm:$0xff]  ;;  %v95_v62 = vld [vmem:[#allocation2 + $0x98] sm:$0xff]  ;;  %v94_v63 = vld [vmem:[#allocation2 + $0x90] sm:$0xff] }
  0x42   :  { %1883 = vmatmul.mubr.msk.f32.vlgmr.msra.gmra.mxu1 %vm154_vm0, %v2233_v5  ;;  %579 = vmatprep.subr.mxu1 %v2241_v14  ;;  %v107_v42 = vrot.slane %v2318_v38, %v2321_v39  ;;  %v111_v43 = vrot.slane %v2318_v38, %v2324_v40  ;;  %v85_v1 = vld [vmem:[#allocation2 + $0x48] sm:$0xff]  ;;  %v84_v2 = vld [vmem:[#allocation2 + $0x40] sm:$0xff] }
  0x43   :  { %580 = vmatpush1.msra.mxu1 %v2243_v15  ;;  %627 = vmatprep.mubr.f32.mxu1 %v2177_v0  ;;  %v2363_v7 = vld [vmem:[#allocation2 + $0xe0] ss:$8 sm:$0x3] }
  0x44   :  { %581 = vmatprep.subr.mxu1 %v2245_v16  ;;  %329 = vmatpush1.msra.mxu0 %v90_v59  ;;  %v139_v9 = vrot.slane %v2363_v7, %v2321_v39 }
  0x45   :  { %582 = vmatpush1.msra.mxu1 %v2250_v17  ;;  %330 = vmatprep.subr.mxu0 %v81_v60 }
  0x46   :  { %583 = vmatprep.subr.mxu1 %v2253_v18  ;;  %331 = vmatpush1.msra.mxu0 %v80_v61 }
  0x47   :  { %584 = vmatpush1.msra.mxu1 %v2257_v19  ;;  %1882 = vmatmul.mubr.msk.f32.vlgmr.msra.gmra.mxu0 %vm154_vm0, %v2233_v5 }
  0x48   :  { %585 = vmatprep.subr.mxu1 %v2260_v20  ;;  %470 = vmatprep.subr.mxu0 %v95_v62 }
  0x49   :  { %586 = vmatpush1.msra.mxu1 %v2263_v21  ;;  %471 = vmatpush1.msra.mxu0 %v94_v63 }
  0x4a   :  { %587 = vmatprep.subr.mxu1 %v2266_v22  ;;  %506 = vmatprep.mubr.f32.mxu0 %v2177_v0 }
  0x4b   :  { %588 = vmatpush1.msra.mxu1 %v2269_v23  ;;  %472 = vmatprep.subr.mxu0 %v85_v1 }
  0x4c   :  { %589 = vmatprep.subr.mxu1 %v2272_v24  ;;  %473 = vmatpush1.msra.mxu0 %v84_v2 }
  0x4d   :  { %590 = vmatpush1.msra.mxu1 %v2275_v25  ;;  %1884 = vmatmul.mubr.msk.f32.vlgmr.msra.gmra.mxu0 %vm154_vm0, %v2233_v5 }
  0x4e   :  { %591 = vmatprep.subr.mxu1 %v2278_v26  ;;  %685 = vmatprep.subr.mxu0 %v2241_v14 }
  0x4f   :  { %592 = vmatpush1.msra.mxu1 %v2281_v27  ;;  %686 = vmatpush1.msra.mxu0 %v2243_v15 }
  0x50   :  { %593 = vmatprep.subr.mxu1 %v2284_v28  ;;  %733 = vmatprep.mubr.f32.mxu0 %v2177_v0 }
  0x51   :  { %594 = vmatpush1.msra.mxu1 %v2287_v29  ;;  %687 = vmatprep.subr.mxu0 %v2245_v16 }
  0x52   :  { %628 = vmatmul.mubr.f32.vlgmr.msra.gmra.mxu1 %v2177_v0  ;;  %791 = vmatprep.subr.mxu1 %v2241_v14 }
  0x53   :  { %792 = vmatpush1.msra.mxu1 %v2243_v15  ;;  %839 = vmatprep.mubr.f32.mxu1 %v2177_v0 }
  0x54   :  { %793 = vmatprep.subr.mxu1 %v2245_v16  ;;  %688 = vmatpush1.msra.mxu0 %v2250_v17 }
  0x55   :  { %794 = vmatpush1.msra.mxu1 %v2250_v17  ;;  %689 = vmatprep.subr.mxu0 %v2253_v18 }
  0x56   :  { %795 = vmatprep.subr.mxu1 %v2253_v18  ;;  %690 = vmatpush1.msra.mxu0 %v2257_v19 }
  0x57   :  { %796 = vmatpush1.msra.mxu1 %v2257_v19  ;;  %691 = vmatprep.subr.mxu0 %v2260_v20 }
  0x58   :  { %797 = vmatprep.subr.mxu1 %v2260_v20  ;;  %692 = vmatpush1.msra.mxu0 %v2263_v21 }
  0x59   :  { %798 = vmatpush1.msra.mxu1 %v2263_v21  ;;  %693 = vmatprep.subr.mxu0 %v2266_v22 }
  0x5a   :  { %799 = vmatprep.subr.mxu1 %v2266_v22  ;;  %694 = vmatpush1.msra.mxu0 %v2269_v23 }
  0x5b   :  { %800 = vmatpush1.msra.mxu1 %v2269_v23  ;;  %695 = vmatprep.subr.mxu0 %v2272_v24 }
  0x5c   :  { %801 = vmatprep.subr.mxu1 %v2272_v24  ;;  %696 = vmatpush1.msra.mxu0 %v2275_v25 }
  0x5d   :  { %802 = vmatpush1.msra.mxu1 %v2275_v25  ;;  %697 = vmatprep.subr.mxu0 %v2278_v26 }
  0x5e   :  { %803 = vmatprep.subr.mxu1 %v2278_v26  ;;  %698 = vmatpush1.msra.mxu0 %v2281_v27 }
  0x5f   :  { %804 = vmatpush1.msra.mxu1 %v2281_v27  ;;  %699 = vmatprep.subr.mxu0 %v2284_v28 }
  0x60   :  { %805 = vmatprep.subr.mxu1 %v2284_v28  ;;  %700 = vmatpush1.msra.mxu0 %v2287_v29 }
  0x61   :  { %806 = vmatpush1.msra.mxu1 %v2287_v29  ;;  %897 = vmatprep.subr.mxu0 %v2241_v14 }
  0x62   :  { %1003 = vmatprep.subr.mxu1 %v2241_v14 }
  0xfa   :  { %v224_v30 = vpop.f32.mrf.mxu1 }
  0xfb   :  { %v225_v45 = vadd.f32 %v224_v30, %v107_v42  ;;  %v114_v42 = vsub.s32 2, %v2314_v34 }
  0xfc   :  { %v226_v31 = vpop.f32.mrf.mxu1 }
  0xfd   :  { %v227_v47 = vadd.f32 %v226_v31, %v111_v43  ;;  %v118_v43 = vsub.s32 3, %v2314_v34 }
  0xfe   :  { %v2311_v33 = vpop.f32.mrf.mxu1 }
 0x100   :  { %v2316_v37 = vpop.f32.mrf.mxu1 }
 0x102   :  { %v2326_v41 = vpop.f32.mrf.mxu1 }
 0x104   :  { %v2332_v44 = vpop.f32.mrf.mxu1 }
 0x107   :  { %v2365_v8 = vpop.f32.mrf.mxu0 }
 0x109   :  { %v2369_v10 = vpop.f32.mrf.mxu0 }
 0x10d   :  { %v508_v11 = vpop.f32.mrf.mxu0 }
 0x10e   :  { %v2371_v12 = vadd.f32 %v508_v11, %v139_v9 }
 0x112   :  { %v629_v46 = vpop.f32.mrf.mxu1 }
 0x113   :  { %v634_v48 = vadd.f32 %v629_v46, %v225_v45  ;;  %v115_v45 = vrot.slane %v2318_v38, %v114_v42  ;;  %v119_v46 = vrot.slane %v2318_v38, %v118_v43 }
 0x114   :  { %v631_v49 = vpop.f32.mrf.mxu1 }
 0x115   :  { %v2334_v50 = vadd.f32 %v631_v49, %v227_v47  ;;  %v1885_v52 = vmul.f32 -1.442695, %v634_v48  ;;  %v2398_v47 = vpop.f32.mrf.mxu0  ;;  %v296_v48 = vadd.f32 %v2311_v33, %v115_v45  ;;  %v130_v45 = vsub.s32 6, %v2314_v34 }
 0x117   :  { %1961 = vtanh.f32 %v2334_v50  ;;  %v1886_v13 = vmul.f32 -1.442695, %v2334_v50  ;;  %v298_v50 = vadd.f32 %v2316_v37, %v119_v46  ;;  %v134_v46 = vsub.s32 7, %v2314_v34 }
 0x118   :  { %1963 = vpow2.f32 %v1885_v52 }
 0x124   :  { %v1962_v51 = vpop.eup %1961 }
 0x125   :  { %651 = vrot.lane.b32.xlu0 %v1962_v51, %s2178_s0  ;;  %v1964_v53 = vpop.eup %1963 }
 0x126   :  { %v642_v54 = vadd.f32 1.0, %v1964_v53 }
 0x128   :  { %1965 = vrcp.f32 %v642_v54 }
 0x135   :  { %v1966_v55 = vpop.eup %1965 }
 0x136   :  { %v649_v3 = vmul.f32 0.0, %v1966_v55 }
 0x197   :  { %v652_v56 = vpop.permute.xlu0 %651 }
 0x198   :  { %v654_v57 = vmul.f32 %v1966_v55, %v652_v56 }
 0x19a   :  { %656 = vrot.lane.b32.xlu0 %v654_v57, %s2178_s0 }
 0x20c   :  { %v657_v4 = vpop.permute.xlu0 %656 }
 0x20d   :  { %v659_v5 = vadd.f32 %v657_v4, %v649_v3 }
 0x20f   :  { %1967 = vtanh.f32 %v659_v5 }
 0x210   :  { %1969 = vpow2.f32 %v1886_v13 }
 0x21c   :  { %v1968_v6 = vpop.eup %1967 }
 0x21d   :  { %662 = vrot.lane.b32.xlu1 %v1968_v6, %s2178_s0  ;;  %v1970_v14 = vpop.eup %1969 }
 0x21e   :  { %v643_v30 = vadd.f32 1.0, %v1970_v14 }
 0x220   :  { %1971 = vrcp.f32 %v643_v30 }
 0x22d   :  { %v1972_v31 = vpop.eup %1971 }
 0x28f   :  { %v663_v35 = vpop.permute.xlu1 %662 }
 0x290   :  { %v2374_v36 = vmul.f32 %v1972_v31, %v663_v35 }
 0x292   :  { %1887 = vmatmul.mubr.msk.f32.vlgmr.msra.gmra.mxu0 %vm559_vm1, %v2374_v36 }
 0x293   :  { %898 = vmatpush1.msra.mxu0 %v2243_v15  ;;  %945 = vmatprep.mubr.f32.mxu0 %v2177_v0 }
 0x294   :  { %899 = vmatprep.subr.mxu0 %v2245_v16 }
 0x295   :  { %900 = vmatpush1.msra.mxu0 %v2250_v17 }
 0x296   :  { %901 = vmatprep.subr.mxu0 %v2253_v18 }
 0x297   :  { %902 = vmatpush1.msra.mxu0 %v2257_v19 }
 0x298   :  { %903 = vmatprep.subr.mxu0 %v2260_v20 }
 0x299   :  { %904 = vmatpush1.msra.mxu0 %v2263_v21 }
 0x29a   :  { %905 = vmatprep.subr.mxu0 %v2266_v22 }
 0x29b   :  { %906 = vmatpush1.msra.mxu0 %v2269_v23 }
 0x29c   :  { %907 = vmatprep.subr.mxu0 %v2272_v24 }
 0x29d   :  { %908 = vmatpush1.msra.mxu0 %v2275_v25 }
 0x29e   :  { %909 = vmatprep.subr.mxu0 %v2278_v26 }
 0x29f   :  { %910 = vmatpush1.msra.mxu0 %v2281_v27 }
 0x2a0   :  { %911 = vmatprep.subr.mxu0 %v2284_v28 }
 0x2a1   :  { %912 = vmatpush1.msra.mxu0 %v2287_v29 }
 0x352   :  { %v735_v49 = vpop.f32.mrf.mxu0 }
 0x353   :  { %v740_v51 = vadd.f32 %v735_v49, %v296_v48  ;;  %v131_v48 = vrot.slane %v2318_v38, %v130_v45  ;;  %v135_v49 = vrot.slane %v2318_v38, %v134_v46  ;;  %v1095_v45 = vld [vmem:[#allocation4 + $0x8] sm:$0xff]  ;;  %v1094_v46 = vld [vmem:[#allocation4] sm:$0xff] }
 0x354   :  { %v737_v52 = vpop.f32.mrf.mxu0 }
 0x355   :  { %v741_v53 = vadd.f32 %v737_v52, %v298_v50  ;;  %v1888_v55 = vmul.f32 -1.442695, %v740_v51  ;;  %v438_v50 = vadd.f32 %v2326_v41, %v131_v48  ;;  %v440_v52 = vadd.f32 %v2332_v44, %v135_v49  ;;  %v2462_v48 = vld [vmem:[#allocation6 + $0xf8] sm:$0xff]  ;;  %v2464_v49 = vld [vmem:[#allocation6 + $0xf0] sm:$0xff] }
 0x357   :  { %1973 = vtanh.f32 %v741_v53  ;;  %v1889_v63 = vmul.f32 -1.442695, %v741_v53 }
 0x358   :  { %1975 = vpow2.f32 %v1888_v55 }
 0x364   :  { %v1974_v54 = vpop.eup %1973 }
 0x365   :  { %757 = vrot.lane.b32.xlu1 %v1974_v54, %s2178_s0  ;;  %v1976_v56 = vpop.eup %1975 }
 0x366   :  { %v748_v57 = vadd.f32 1.0, %v1976_v56 }
 0x368   :  { %1977 = vrcp.f32 %v748_v57 }
 0x375   :  { %v1978_v58 = vpop.eup %1977 }
 0x376   :  { %v755_v33 = vmul.f32 %v1978_v58, %v659_v5 }
 0x3d7   :  { %v758_v59 = vpop.permute.xlu1 %757 }
 0x3d8   :  { %v760_v60 = vmul.f32 %v1978_v58, %v758_v59 }
 0x3da   :  { %762 = vrot.lane.b32.xlu0 %v760_v60, %s2178_s0 }
 0x44c   :  { %v763_v61 = vpop.permute.xlu0 %762 }
 0x44d   :  { %v765_v37 = vadd.f32 %v763_v61, %v755_v33 }
 0x44f   :  { %1979 = vtanh.f32 %v765_v37 }
 0x450   :  { %1981 = vpow2.f32 %v1889_v63 }
 0x45c   :  { %v1980_v62 = vpop.eup %1979 }
 0x45d   :  { %768 = vrot.lane.b32.xlu1 %v1980_v62, %s2178_s0  ;;  %v1982_v1 = vpop.eup %1981 }
 0x45e   :  { %v749_v2 = vadd.f32 1.0, %v1982_v1 }
 0x460   :  { %1983 = vrcp.f32 %v749_v2 }
 0x46d   :  { %v1984_v3 = vpop.eup %1983 }
 0x4cf   :  { %v769_v4 = vpop.permute.xlu1 %768 }
 0x4d0   :  { %v2405_v6 = vmul.f32 %v1984_v3, %v769_v4  ;;  %v143_v4 = vrot.slane %v2363_v7, %v2324_v40 }
 0x4d2   :  { %1890 = vmatmul.mubr.msk.f32.vlgmr.msra.gmra.mxu1 %vm559_vm1, %v2405_v6 }
 0x4d3   :  { %1004 = vmatpush1.msra.mxu1 %v2243_v15  ;;  %1051 = vmatprep.mubr.f32.mxu1 %v2177_v0  ;;  %v122_v15 = vsub.s32 4, %v2314_v34 }
 0x4d4   :  { %1005 = vmatprep.subr.mxu1 %v2245_v16  ;;  %v126_v16 = vsub.s32 5, %v2314_v34 }
 0x4d5   :  { %1006 = vmatpush1.msra.mxu1 %v2250_v17  ;;  %v123_v17 = vrot.slane %v2318_v38, %v122_v15 }
 0x4d6   :  { %1007 = vmatprep.subr.mxu1 %v2253_v18  ;;  %v127_v18 = vrot.slane %v2318_v38, %v126_v16  ;;  %v511_v16 = vadd.f32 %v2398_v47, %v143_v4  ;;  %v1109_v47 = vld [vmem:[#allocation4 + $0x78] sm:$0xff] }
 0x4d7   :  { %1008 = vmatpush1.msra.mxu1 %v2257_v19  ;;  %v367_v19 = vadd.f32 %v2365_v8, %v123_v17  ;;  %1151 = vmatprep.subr.mxu0 %v1109_v47 }
 0x4d8   :  { %1009 = vmatprep.subr.mxu1 %v2260_v20 }
 0x4d9   :  { %1010 = vmatpush1.msra.mxu1 %v2263_v21  ;;  %v369_v21 = vadd.f32 %v2369_v10, %v127_v18 }
 0x4da   :  { %1011 = vmatprep.subr.mxu1 %v2266_v22 }
 0x4db   :  { %1012 = vmatpush1.msra.mxu1 %v2269_v23 }
 0x4dc   :  { %1013 = vmatprep.subr.mxu1 %v2272_v24 }
 0x4dd   :  { %1014 = vmatpush1.msra.mxu1 %v2275_v25 }
 0x4de   :  { %1015 = vmatprep.subr.mxu1 %v2278_v26 }
 0x4df   :  { %1016 = vmatpush1.msra.mxu1 %v2281_v27 }
 0x4e0   :  { %1017 = vmatprep.subr.mxu1 %v2284_v28 }
 0x4e1   :  { %1018 = vmatpush1.msra.mxu1 %v2287_v29 }
 0x4e2   :  { %1264 = vmatprep.subr.mxu1 %v2462_v48 }
 0x592   :  { %v841_v20 = vpop.f32.mrf.mxu1 }
 0x593   :  { %v846_v22 = vadd.f32 %v841_v20, %v367_v19 }
 0x594   :  { %v843_v23 = vpop.f32.mrf.mxu1 }
 0x595   :  { %v847_v24 = vadd.f32 %v843_v23, %v369_v21  ;;  %v1891_v26 = vmul.f32 -1.442695, %v846_v22 }
 0x597   :  { %1985 = vtanh.f32 %v847_v24  ;;  %v1892_v14 = vmul.f32 -1.442695, %v847_v24 }
 0x598   :  { %1987 = vpow2.f32 %v1891_v26  ;;  %v1107_v26 = vld [vmem:[#allocation4 + $0x68] sm:$0xff] }
 0x5a4   :  { %v1986_v25 = vpop.eup %1985 }
 0x5a5   :  { %863 = vrot.lane.b32.xlu0 %v1986_v25, %s2178_s0  ;;  %v1988_v27 = vpop.eup %1987 }
 0x5a6   :  { %v854_v28 = vadd.f32 1.0, %v1988_v27  ;;  %v1106_v27 = vld [vmem:[#allocation4 + $0x60] sm:$0xff] }
 0x5a8   :  { %1989 = vrcp.f32 %v854_v28  ;;  %v1105_v28 = vld [vmem:[#allocation4 + $0x58] sm:$0xff] }
 0x5b5   :  { %v1990_v29 = vpop.eup %1989 }
 0x5b6   :  { %v861_v8 = vmul.f32 %v1990_v29, %v765_v37 }
 0x617   :  { %v864_v5 = vpop.permute.xlu0 %863 }
 0x618   :  { %v866_v9 = vmul.f32 %v1990_v29, %v864_v5  ;;  %v1104_v29 = vld [vmem:[#allocation4 + $0x50] sm:$0xff]  ;;  %v1103_v5 = vld [vmem:[#allocation4 + $0x48] sm:$0xff] }
 0x61a   :  { %868 = vrot.lane.b32.xlu1 %v866_v9, %s2178_s0  ;;  %v1102_v9 = vld [vmem:[#allocation4 + $0x40] sm:$0xff] }
 0x68c   :  { %v869_v11 = vpop.permute.xlu1 %868 }
 0x68d   :  { %v871_v10 = vadd.f32 %v869_v11, %v861_v8  ;;  %v1101_v8 = vld [vmem:[#allocation4 + $0x38] sm:$0xff]  ;;  %v1100_v11 = vld [vmem:[#allocation4 + $0x30] sm:$0xff] }
 0x68f   :  { %1991 = vtanh.f32 %v871_v10 }
 0x690   :  { %1993 = vpow2.f32 %v1892_v14  ;;  %v1097_v14 = vld [vmem:[#allocation4 + $0x18] sm:$0xff] }
 0x69c   :  { %v1992_v13 = vpop.eup %1991 }
 0x69d   :  { %874 = vrot.lane.b32.xlu0 %v1992_v13, %s2178_s0  ;;  %v1994_v30 = vpop.eup %1993  ;;  %v1098_v13 = vld [vmem:[#allocation4 + $0x20] sm:$0xff] }
 0x69e   :  { %v855_v31 = vadd.f32 1.0, %v1994_v30 }
 0x6a0   :  { %1995 = vrcp.f32 %v855_v31 }
 0x6ad   :  { %v1996_v35 = vpop.eup %1995 }
 0x70f   :  { %v875_v42 = vpop.permute.xlu0 %874 }
 0x710   :  { %v2434_v43 = vmul.f32 %v1996_v35, %v875_v42  ;;  %v1096_v42 = vld [vmem:[#allocation4 + $0x10] sm:$0xff] }
 0x712   :  { %1893 = vmatmul.mubr.msk.f32.vlgmr.msra.gmra.mxu0 %vm559_vm1, %v2434_v43 }
 0x713   :  { %1199 = vmatprep.mubr.f32.mxu0 %v2177_v0 }
 0x7d2   :  { %v947_v51 = vpop.f32.mrf.mxu0 }
 0x7d3   :  { %v952_v53 = vadd.f32 %v947_v51, %v438_v50  ;;  %v2467_v50 = vld [vmem:[#allocation6 + $0xe8] sm:$0xff]  ;;  %v2472_v51 = vld [vmem:[#allocation6 + $0xe0] sm:$0xff] }
 0x7d4   :  { %v949_v54 = vpop.f32.mrf.mxu0 }
 0x7d5   :  { %v953_v55 = vadd.f32 %v949_v54, %v440_v52  ;;  %v1894_v57 = vmul.f32 -1.442695, %v952_v53  ;;  %v2475_v52 = vld [vmem:[#allocation6 + $0xd8] sm:$0xff]  ;;  %v2477_v53 = vld [vmem:[#allocation6 + $0xd0] sm:$0xff]  ;;  %v2480_v54 = vld [vmem:[#allocation6 + $0xc8] sm:$0xff] }
 0x7d7   :  { %1997 = vtanh.f32 %v953_v55  ;;  %v1895_v37 = vmul.f32 -1.442695, %v953_v55  ;;  %v2484_v55 = vld [vmem:[#allocation6 + $0xc0] sm:$0xff] }
 0x7d8   :  { %1999 = vpow2.f32 %v1894_v57  ;;  %v2489_v57 = vld [vmem:[#allocation6 + $0xb0] sm:$0xff] }
 0x7e4   :  { %v1998_v56 = vpop.eup %1997 }
 0x7e5   :  { %969 = vrot.lane.b32.xlu1 %v1998_v56, %s2178_s0  ;;  %v2000_v58 = vpop.eup %1999  ;;  %v2487_v56 = vld [vmem:[#allocation6 + $0xb8] sm:$0xff] }
 0x7e6   :  { %v960_v34 = vadd.f32 1.0, %v2000_v58 }
 0x7e8   :  { %2001 = vrcp.f32 %v960_v34  ;;  %v2492_v34 = vld [vmem:[#allocation6 + $0xa8] sm:$0xff] }
 0x7f5   :  { %v2002_v59 = vpop.eup %2001 }
 0x7f6   :  { %v967_v41 = vmul.f32 %v2002_v59, %v871_v10  ;;  %v1099_v10 = vld [vmem:[#allocation4 + $0x28] sm:$0xff] }
 0x857   :  { %v970_v60 = vpop.permute.xlu1 %969 }
 0x858   :  { %v972_v38 = vmul.f32 %v2002_v59, %v970_v60  ;;  %v2497_v59 = vld [vmem:[#allocation6 + $0xa0] sm:$0xff]  ;;  %v2500_v60 = vld [vmem:[#allocation6 + $0x98] sm:$0xff] }
 0x85a   :  { %974 = vrot.lane.b32.xlu0 %v972_v38, %s2178_s0  ;;  %v2502_v38 = vld [vmem:[#allocation6 + $0x90] sm:$0xff] }
 0x8cc   :  { %v975_v33 = vpop.permute.xlu0 %974 }
 0x8cd   :  { %v977_v44 = vadd.f32 %v975_v33, %v967_v41  ;;  %v2505_v41 = vld [vmem:[#allocation6 + $0x88] sm:$0xff]  ;;  %v2509_v33 = vld [vmem:[#allocation6 + $0x80] sm:$0xff] }
 0x8cf   :  { %2003 = vtanh.f32 %v977_v44 }
 0x8d0   :  { %2005 = vpow2.f32 %v1895_v37 }
 0x8dc   :  { %v2004_v61 = vpop.eup %2003 }
 0x8dd   :  { %980 = vrot.lane.b32.xlu1 %v2004_v61, %s2178_s0  ;;  %v2006_v62 = vpop.eup %2005 }
 0x8de   :  { %v961_v63 = vadd.f32 1.0, %v2006_v62  ;;  %v514_v62 = vand.u32 127, %v104_v32 }
 0x8e0   :  { %2007 = vrcp.f32 %v961_v63  ;;  %vm542_vm2 = vcmp.lt.s32.totalorder %v514_v62, 32 }
 0x8ed   :  { %v2008_v1 = vpop.eup %2007 }
 0x94f   :  { %v981_v2 = vpop.permute.xlu1 %980 }
 0x950   :  { %v2448_v3 = vmul.f32 %v2008_v1, %v981_v2 }
 0x952   :  { %1896 = vmatmul.mubr.msk.f32.vlgmr.msra.gmra.mxu1 %vm559_vm1, %v2448_v3  ;;  %v1092_v32 = vsel %vm542_vm2, %v2448_v3, %v2405_v6 }
 0x953   :  { %1312 = vmatprep.mubr.f32.mxu1 %v2177_v0  ;;  %1265 = vmatpush1.msra.mxu1 %v2464_v49 }
 0x954   :  { %1266 = vmatprep.subr.mxu1 %v2467_v50 }
 0x955   :  { %1267 = vmatpush1.msra.mxu1 %v2472_v51 }
 0x956   :  { %1268 = vmatprep.subr.mxu1 %v2475_v52 }
 0x957   :  { %1269 = vmatpush1.msra.mxu1 %v2477_v53 }
 0x958   :  { %1270 = vmatprep.subr.mxu1 %v2480_v54 }
 0x959   :  { %1271 = vmatpush1.msra.mxu1 %v2484_v55 }
 0x95a   :  { %1272 = vmatprep.subr.mxu1 %v2487_v56 }
 0x95b   :  { %1273 = vmatpush1.msra.mxu1 %v2489_v57 }
 0x95c   :  { %1274 = vmatprep.subr.mxu1 %v2492_v34 }
 0x95d   :  { %1275 = vmatpush1.msra.mxu1 %v2497_v59 }
 0x95e   :  { %1276 = vmatprep.subr.mxu1 %v2500_v60 }
 0x95f   :  { %1277 = vmatpush1.msra.mxu1 %v2502_v38 }
 0x960   :  { %1278 = vmatprep.subr.mxu1 %v2505_v41 }
 0x961   :  { %1279 = vmatpush1.msra.mxu1 %v2509_v33 }
 0x962   :  { %1313 = vmatmul.mubr.f32.vlgmr.msra.gmra.mxu1 %v2177_v0  ;;  %1480 = vmatprep.subr.mxu1 %v2462_v48 }
 0x963   :  { %1481 = vmatpush1.msra.mxu1 %v2464_v49  ;;  %1528 = vmatprep.mubr.f32.mxu1 %v2177_v0 }
 0x964   :  { %1482 = vmatprep.subr.mxu1 %v2467_v50 }
 0x965   :  { %1483 = vmatpush1.msra.mxu1 %v2472_v51 }
 0x966   :  { %1484 = vmatprep.subr.mxu1 %v2475_v52 }
 0x967   :  { %1485 = vmatpush1.msra.mxu1 %v2477_v53 }
 0x968   :  { %1486 = vmatprep.subr.mxu1 %v2480_v54 }
 0x969   :  { %1487 = vmatpush1.msra.mxu1 %v2484_v55 }
 0x96a   :  { %1488 = vmatprep.subr.mxu1 %v2487_v56 }
 0x96b   :  { %1489 = vmatpush1.msra.mxu1 %v2489_v57 }
 0x96c   :  { %1490 = vmatprep.subr.mxu1 %v2492_v34 }
 0x96d   :  { %1491 = vmatpush1.msra.mxu1 %v2497_v59 }
 0x96e   :  { %1492 = vmatprep.subr.mxu1 %v2500_v60 }
 0x96f   :  { %1493 = vmatpush1.msra.mxu1 %v2502_v38 }
 0x970   :  { %1494 = vmatprep.subr.mxu1 %v2505_v41 }
 0x971   :  { %1495 = vmatpush1.msra.mxu1 %v2509_v33 }
 0x972   :  { %1698 = vmatprep.subr.mxu1 %v2462_v48 }
 0xa12   :  { %v1053_v15 = vpop.f32.mrf.mxu1 }
 0xa13   :  { %v1058_v17 = vadd.f32 %v1053_v15, %v2371_v12  ;;  %v1108_v12 = vld [vmem:[#allocation4 + $0x70] sm:$0xff]  ;;  %v1091_v15 = vsel %vm542_vm2, %v2405_v6, %v2448_v3  ;;  %v1111_v6 = vld [vmem:[#allocation4 + $0x80] ss:$8 sm:$0x3] }
 0xa14   :  { %v1055_v18 = vpop.f32.mrf.mxu1  ;;  %1152 = vmatpush1.msra.mxu0 %v1108_v12  ;;  %v1116_v3 = vrot.slane %v1111_v6, %v2321_v39 }
 0xa15   :  { %v2457_v19 = vadd.f32 %v1055_v18, %v511_v16  ;;  %v1897_v21 = vmul.f32 -1.442695, %v1058_v17  ;;  %1153 = vmatprep.subr.mxu0 %v1107_v26 }
 0xa16   :  { %1154 = vmatpush1.msra.mxu0 %v1106_v27 }
 0xa17   :  { %2009 = vtanh.f32 %v2457_v19  ;;  %1155 = vmatprep.subr.mxu0 %v1105_v28 }
 0xa18   :  { %2011 = vpow2.f32 %v1897_v21  ;;  %1156 = vmatpush1.msra.mxu0 %v1104_v29  ;;  %v1792_v29 = vld [vmem:[#allocation7 + $0x30] sm:$0xff] }
 0xa19   :  { %1157 = vmatprep.subr.mxu0 %v1103_v5 }
 0xa1a   :  { %1158 = vmatpush1.msra.mxu0 %v1102_v9 }
 0xa1b   :  { %1159 = vmatprep.subr.mxu0 %v1101_v8 }
 0xa1c   :  { %1160 = vmatpush1.msra.mxu0 %v1100_v11 }
 0xa1d   :  { %1161 = vmatprep.subr.mxu0 %v1099_v10 }
 0xa1e   :  { %1162 = vmatpush1.msra.mxu0 %v1098_v13 }
 0xa1f   :  { %1163 = vmatprep.subr.mxu0 %v1097_v14 }
 0xa20   :  { %1164 = vmatpush1.msra.mxu0 %v1096_v42 }
 0xa21   :  { %1165 = vmatprep.subr.mxu0 %v1095_v45 }
 0xa22   :  { %1166 = vmatpush1.msra.mxu0 %v1094_v46  ;;  %v1314_v13 = vpop.f32.mrf.mxu1 }
 0xa23   :  { %1373 = vmatprep.subr.mxu0 %v2462_v48 }
 0xa24   :  { %v2010_v20 = vpop.eup %2009 }
 0xa25   :  { %1075 = vrot.lane.b32.xlu0 %v2010_v20, %s2178_s0  ;;  %v2012_v22 = vpop.eup %2011  ;;  %v1120_v20 = vrot.slane %v1111_v6, %v2324_v40 }
 0xa26   :  { %v1066_v23 = vadd.f32 1.0, %v2012_v22  ;;  %v515_v22 = vadd.s32 128, %v514_v62 }
 0xa28   :  { %2013 = vrcp.f32 %v1066_v23  ;;  %v527_v12 = vand.u32 63, %v515_v22 }
 0xa2a   :  { %vm2588_vm4 = vcmp.lt.s32.totalorder %v527_v12, 32 }
 0xa35   :  { %v2014_v24 = vpop.eup %2013 }
 0xa36   :  { %v1073_v30 = vmul.f32 %v2014_v24, %v977_v44  ;;  %v1898_v44 = vmul.f32 -1.442695, %v2457_v19 }
 0xa97   :  { %v1076_v7 = vpop.permute.xlu0 %1075 }
 0xa98   :  { %v1078_v25 = vmul.f32 %v2014_v24, %v1076_v7  ;;  %v520_v7 = vand.u32 63, %v514_v62 }
 0xa9a   :  { %1080 = vrot.lane.b32.xlu1 %v1078_v25, %s2178_s0  ;;  %vm2582_vm3 = vcmp.lt.s32.totalorder %v520_v7, 32 }
 0xb0c   :  { %v1081_v31 = vpop.permute.xlu1 %1080 }
 0xb0d   :  { %v1083_v35 = vadd.f32 %v1081_v31, %v1073_v30 }
 0xb0f   :  { %2015 = vtanh.f32 %v1083_v35 }
 0xb10   :  { %2017 = vpow2.f32 %v1898_v44 }
 0xb1c   :  { %v2016_v58 = vpop.eup %2015 }
 0xb1d   :  { %1086 = vrot.lane.b32.xlu0 %v2016_v58, %s2178_s0  ;;  %v2018_v61 = vpop.eup %2017  ;;  %v1316_v58 = vpop.f32.mrf.mxu1 }
 0xb1e   :  { %v1067_v37 = vadd.f32 1.0, %v2018_v61 }
 0xb20   :  { %2019 = vrcp.f32 %v1067_v37 }
 0xb2d   :  { %v2020_v63 = vpop.eup %2019 }
 0xb8f   :  { %v1087_v1 = vpop.permute.xlu0 %1086 }
 0xb90   :  { %v1089_v2 = vmul.f32 %v2020_v63, %v1087_v1 }
 0xb92   :  { %v1090_v4 = vsel %vm542_vm2, %v2374_v36, %v1089_v2 }
 0xb93   :  { %1899 = vmatmul.mubr.msk.f32.vlgmr.msra.gmra.mxu0 %vm559_vm1, %v1090_v4 }
 0xb94   :  { %1205 = vmatprep.mubr.f32.mxu0 %v2177_v0  ;;  %1374 = vmatpush1.msra.mxu0 %v2464_v49 }
 0xb95   :  { %1375 = vmatprep.subr.mxu0 %v2467_v50 }
 0xb96   :  { %1376 = vmatpush1.msra.mxu0 %v2472_v51 }
 0xb97   :  { %1900 = vmatmul.mubr.msk.f32.gmra.mxu0 %vm559_vm1, %v1091_v15  ;;  %1377 = vmatprep.subr.mxu0 %v2475_v52 }
 0xb98   :  { %1211 = vmatprep.mubr.f32.mxu0 %v2177_v0  ;;  %1378 = vmatpush1.msra.mxu0 %v2477_v53 }
 0xb99   :  { %1379 = vmatprep.subr.mxu0 %v2480_v54 }
 0xb9a   :  { %1380 = vmatpush1.msra.mxu0 %v2484_v55 }
 0xb9b   :  { %1901 = vmatmul.mubr.msk.f32.gmra.mxu0 %vm559_vm1, %v2434_v43  ;;  %1381 = vmatprep.subr.mxu0 %v2487_v56  ;;  %v1093_v43 = vsel %vm542_vm2, %v1089_v2, %v2374_v36 }
 0xb9c   :  { %1217 = vmatprep.mubr.f32.mxu0 %v2177_v0  ;;  %1382 = vmatpush1.msra.mxu0 %v2489_v57 }
 0xb9d   :  { %1383 = vmatprep.subr.mxu0 %v2492_v34 }
 0xb9e   :  { %1384 = vmatpush1.msra.mxu0 %v2497_v59 }
 0xb9f   :  { %1902 = vmatmul.mubr.msk.f32.gmra.mxu0 %vm559_vm1, %v1092_v32  ;;  %1385 = vmatprep.subr.mxu0 %v2500_v60 }
 0xba0   :  { %1223 = vmatprep.mubr.f32.mxu0 %v2177_v0  ;;  %1386 = vmatpush1.msra.mxu0 %v2502_v38 }
 0xba1   :  { %1387 = vmatprep.subr.mxu0 %v2505_v41 }
 0xba2   :  { %1388 = vmatpush1.msra.mxu0 %v2509_v33 }
 0xba3   :  { %1903 = vmatmul.mubr.msk.f32.gmra.mxu0 %vm559_vm1, %v1093_v43  ;;  %1589 = vmatprep.subr.mxu0 %v2462_v48 }
 0xba4   :  { %1421 = vmatprep.mubr.f32.mxu0 %v2177_v0 }
 0xc53   :  { %v1201_v16 = vpop.f32.mrf.mxu0 }
 0xc54   :  { %v2571_v17 = vadd.f32 %v1201_v16, %v1116_v3 }
 0xc55   :  { %v1203_v18 = vpop.f32.mrf.mxu0 }
 0xc56   :  { %v2612_v35 = vadd.f32 %v1203_v18, %v1120_v20 }
 0xc57   :  { %v1207_v19 = vpop.f32.mrf.mxu0 }
 0xc58   :  { %v2574_v21 = vadd.f32 %v1207_v19, %v1116_v3 }
 0xc59   :  { %v1209_v36 = vpop.f32.mrf.mxu0 }
 0xc5a   :  { %v2576_v23 = vadd.f32 %v1209_v36, %v1120_v20 }
 0xc5b   :  { %v1213_v24 = vpop.f32.mrf.mxu0 }
 0xc5c   :  { %v2578_v25 = vadd.f32 %v1213_v24, %v1116_v3 }
 0xc5d   :  { %v1215_v47 = vpop.f32.mrf.mxu0 }
 0xc5e   :  { %v2580_v39 = vadd.f32 %v1215_v47, %v1120_v20 }
 0xc5f   :  { %v1219_v26 = vpop.f32.mrf.mxu0 }
 0xc60   :  { %v2586_v40 = vadd.f32 %v1219_v26, %v1116_v3 }
 0xc61   :  { %v1221_v28 = vpop.f32.mrf.mxu0 }
 0xc62   :  { %v2592_v5 = vadd.f32 %v1221_v28, %v1120_v20  ;;  %v1352_v9 = vsel %vm2582_vm3, %v2574_v21, %v2586_v40  ;;  %v1568_v8 = vsel %vm2582_vm3, %v2586_v40, %v2574_v21 }
 0xc63   :  { %v1225_v11 = vpop.f32.mrf.mxu0 }
 0xc64   :  { %v2602_v10 = vadd.f32 %v1225_v11, %v1116_v3  ;;  %v1353_v14 = vsel %vm2588_vm4, %v2576_v23, %v2592_v5  ;;  %v1569_v30 = vsel %vm2588_vm4, %v2592_v5, %v2576_v23 }
 0xc65   :  { %v1227_v31 = vpop.f32.mrf.mxu0 }
 0xc66   :  { %v1246_v42 = vsel %vm2582_vm3, %v2571_v17, %v2602_v10  ;;  %v2618_v45 = vadd.f32 %v1227_v31, %v1120_v20  ;;  %v1677_v46 = vsel %vm2582_vm3, %v2602_v10, %v2571_v17  ;;  %v1793_v10 = vld [vmem:[#allocation7 + $0x38] sm:$0xff] }
 0xc67   :  { %v1319_v62 = vadd.f32 %v1314_v13, %v1246_v42 }
 0xc68   :  { %v1247_v48 = vsel %vm2588_vm4, %v2612_v35, %v2618_v45  ;;  %v1678_v44 = vsel %vm2588_vm4, %v2618_v45, %v2612_v35  ;;  %v1791_v35 = vld [vmem:[#allocation7 + $0x28] sm:$0xff]  ;;  %v1790_v45 = vld [vmem:[#allocation7 + $0x20] sm:$0xff] }
 0xc69   :  { %v1320_v61 = vadd.f32 %v1316_v58, %v1247_v48  ;;  %v1904_v63 = vmul.f32 -1.442695, %v1319_v62 }
 0xc6b   :  { %2021 = vtanh.f32 %v1320_v61  ;;  %v1905_v18 = vmul.f32 -1.442695, %v1320_v61 }
 0xc6c   :  { %2023 = vpow2.f32 %v1904_v63 }
 0xc78   :  { %v2022_v37 = vpop.eup %2021 }
 0xc79   :  { %1336 = vrot.lane.b32.xlu1 %v2022_v37, %s2178_s0  ;;  %v2024_v1 = vpop.eup %2023 }
 0xc7a   :  { %v1327_v2 = vadd.f32 1.0, %v2024_v1 }
 0xc7c   :  { %2025 = vrcp.f32 %v1327_v2 }
 0xc89   :  { %v2026_v4 = vpop.eup %2025 }
 0xc8a   :  { %v1334_v43 = vmul.f32 0.0, %v2026_v4 }
 0xceb   :  { %v1337_v15 = vpop.permute.xlu1 %1336 }
 0xcec   :  { %v1339_v32 = vmul.f32 %v2026_v4, %v1337_v15 }
 0xcee   :  { %1341 = vrot.lane.b32.xlu0 %v1339_v32, %s2178_s0 }
 0xd60   :  { %v1342_v6 = vpop.permute.xlu0 %1341 }
 0xd61   :  { %v1344_v3 = vadd.f32 %v1342_v6, %v1334_v43 }
 0xd63   :  { %2027 = vtanh.f32 %v1344_v3 }
 0xd64   :  { %2029 = vpow2.f32 %v1905_v18 }
 0xd70   :  { %v2028_v16 = vpop.eup %2027 }
 0xd71   :  { %1347 = vrot.lane.b32.xlu1 %v2028_v16, %s2178_s0  ;;  %v2030_v19 = vpop.eup %2029 }
 0xd72   :  { %v1328_v20 = vadd.f32 1.0, %v2030_v19 }
 0xd74   :  { %2031 = vrcp.f32 %v1328_v20 }
 0xd81   :  { %v2032_v36 = vpop.eup %2031 }
 0xde3   :  { %v1348_v22 = vpop.permute.xlu1 %1347 }
 0xde4   :  { %v2635_v24 = vmul.f32 %v2032_v36, %v1348_v22 }
 0xde6   :  { %1906 = vmatmul.mubr.msk.f32.vlgmr.msra.gmra.mxu0 %vm559_vm1, %v2635_v24 }
 0xde7   :  { %1590 = vmatpush1.msra.mxu0 %v2464_v49  ;;  %1637 = vmatprep.mubr.f32.mxu0 %v2177_v0 }
 0xde8   :  { %1591 = vmatprep.subr.mxu0 %v2467_v50 }
 0xde9   :  { %1592 = vmatpush1.msra.mxu0 %v2472_v51 }
 0xdea   :  { %1593 = vmatprep.subr.mxu0 %v2475_v52 }
 0xdeb   :  { %1594 = vmatpush1.msra.mxu0 %v2477_v53 }
 0xdec   :  { %1595 = vmatprep.subr.mxu0 %v2480_v54 }
 0xded   :  { %1596 = vmatpush1.msra.mxu0 %v2484_v55 }
 0xdee   :  { %1597 = vmatprep.subr.mxu0 %v2487_v56 }
 0xdef   :  { %1598 = vmatpush1.msra.mxu0 %v2489_v57 }
 0xdf0   :  { %1599 = vmatprep.subr.mxu0 %v2492_v34 }
 0xdf1   :  { %1600 = vmatpush1.msra.mxu0 %v2497_v59 }
 0xdf2   :  { %1601 = vmatprep.subr.mxu0 %v2500_v60 }
 0xdf3   :  { %1602 = vmatpush1.msra.mxu0 %v2502_v38 }
 0xdf4   :  { %1603 = vmatprep.subr.mxu0 %v2505_v41 }
 0xdf5   :  { %1604 = vmatpush1.msra.mxu0 %v2509_v33 }
 0xdf6   :  { %1929 = vmatprep.subr.mxu0 %v2177_v0 }
 0xea6   :  { %v1423_v7 = vpop.f32.mrf.mxu0 }
 0xea7   :  { %v1428_v47 = vadd.f32 %v1423_v7, %v1352_v9 }
 0xea8   :  { %v1425_v12 = vpop.f32.mrf.mxu0 }
 0xea9   :  { %v1429_v26 = vadd.f32 %v1425_v12, %v1353_v14  ;;  %v1907_v11 = vmul.f32 -1.442695, %v1428_v47 }
 0xeab   :  { %2033 = vtanh.f32 %v1429_v26  ;;  %v1908_v14 = vmul.f32 -1.442695, %v1429_v26 }
 0xeac   :  { %2035 = vpow2.f32 %v1907_v11 }
 0xeb8   :  { %v2034_v28 = vpop.eup %2033 }
 0xeb9   :  { %1445 = vrot.lane.b32.xlu0 %v2034_v28, %s2178_s0  ;;  %v2036_v13 = vpop.eup %2035 }
 0xeba   :  { %v1436_v31 = vadd.f32 1.0, %v2036_v13 }
 0xebc   :  { %2037 = vrcp.f32 %v1436_v31 }
 0xec9   :  { %v2038_v42 = vpop.eup %2037 }
 0xeca   :  { %v1443_v61 = vmul.f32 %v2038_v42, %v1344_v3 }
 0xf2b   :  { %v1446_v48 = vpop.permute.xlu0 %1445 }
 0xf2c   :  { %v1448_v58 = vmul.f32 %v2038_v42, %v1446_v48 }
 0xf2e   :  { %1450 = vrot.lane.b32.xlu1 %v1448_v58, %s2178_s0 }
 0xfa0   :  { %v1451_v37 = vpop.permute.xlu1 %1450 }
 0xfa1   :  { %v1453_v62 = vadd.f32 %v1451_v37, %v1443_v61 }
 0xfa3   :  { %2039 = vtanh.f32 %v1453_v62 }
 0xfa4   :  { %2041 = vpow2.f32 %v1908_v14 }
 0xfb0   :  { %v2040_v9 = vpop.eup %2039 }
 0xfb1   :  { %1456 = vrot.lane.b32.xlu0 %v2040_v9, %s2178_s0  ;;  %v2042_v63 = vpop.eup %2041 }
 0xfb2   :  { %v1437_v1 = vadd.f32 1.0, %v2042_v63 }
 0xfb4   :  { %2043 = vrcp.f32 %v1437_v1 }
 0xfc1   :  { %v2044_v2 = vpop.eup %2043 }
0x1023   :  { %v1457_v4 = vpop.permute.xlu0 %1456 }
0x1024   :  { %v1459_v15 = vmul.f32 %v2044_v2, %v1457_v4 }
0x1026   :  { %1909 = vmatmul.mubr.msk.f32.vlgmr.msra.gmra.mxu1 %vm559_vm1, %v1459_v15  ;;  %v1460_v3 = vadd.f32 %v1459_v15, %v2635_v24 }
0x1027   :  { %1699 = vmatpush1.msra.mxu1 %v2464_v49  ;;  %1746 = vmatprep.mubr.f32.mxu1 %v2177_v0 }
0x1028   :  { %1700 = vmatprep.subr.mxu1 %v2467_v50 }
0x1029   :  { %1701 = vmatpush1.msra.mxu1 %v2472_v51 }
0x102a   :  { %1702 = vmatprep.subr.mxu1 %v2475_v52 }
0x102b   :  { %1703 = vmatpush1.msra.mxu1 %v2477_v53 }
0x102c   :  { %1704 = vmatprep.subr.mxu1 %v2480_v54 }
0x102d   :  { %1705 = vmatpush1.msra.mxu1 %v2484_v55 }
0x102e   :  { %1706 = vmatprep.subr.mxu1 %v2487_v56 }
0x102f   :  { %1707 = vmatpush1.msra.mxu1 %v2489_v57 }
0x1030   :  { %1708 = vmatprep.subr.mxu1 %v2492_v34 }
0x1031   :  { %1709 = vmatpush1.msra.mxu1 %v2497_v59 }
0x1032   :  { %1710 = vmatprep.subr.mxu1 %v2500_v60 }
0x1033   :  { %1711 = vmatpush1.msra.mxu1 %v2502_v38 }
0x1034   :  { %1712 = vmatprep.subr.mxu1 %v2505_v41 }
0x1035   :  { %1713 = vmatpush1.msra.mxu1 %v2509_v33 }
0x10e6   :  { %v1530_v49 = vpop.f32.mrf.mxu1 }
0x10e7   :  { %v1535_v50 = vadd.f32 %v1530_v49, %v2578_v25 }
0x10e8   :  { %v1532_v51 = vpop.f32.mrf.mxu1 }
0x10e9   :  { %v1536_v52 = vadd.f32 %v1532_v51, %v2580_v39  ;;  %v1910_v54 = vmul.f32 -1.442695, %v1535_v50  ;;  %v1787_v51 = vld [vmem:[#allocation7 + $0x8] sm:$0xff] }
0x10eb   :  { %2045 = vtanh.f32 %v1536_v52  ;;  %v1911_v25 = vmul.f32 -1.442695, %v1536_v52  ;;  %v1786_v52 = vld [vmem:[#allocation7] sm:$0xff] }
0x10ec   :  { %2047 = vpow2.f32 %v1910_v54 }
0x10f8   :  { %v2046_v53 = vpop.eup %2045 }
0x10f9   :  { %1552 = vrot.lane.b32.xlu1 %v2046_v53, %s2178_s0  ;;  %v2048_v55 = vpop.eup %2047 }
0x10fa   :  { %v1543_v56 = vadd.f32 1.0, %v2048_v55 }
0x10fc   :  { %2049 = vrcp.f32 %v1543_v56 }
0x1109   :  { %v2050_v57 = vpop.eup %2049 }
0x110a   :  { %v1550_v60 = vmul.f32 %v2050_v57, %v1453_v62 }
0x116b   :  { %v1553_v34 = vpop.permute.xlu1 %1552 }
0x116c   :  { %v1555_v59 = vmul.f32 %v2050_v57, %v1553_v34 }
0x116e   :  { %1557 = vrot.lane.b32.xlu0 %v1555_v59, %s2178_s0 }
0x11e0   :  { %v1558_v38 = vpop.permute.xlu0 %1557 }
0x11e1   :  { %v1560_v41 = vadd.f32 %v1558_v38, %v1550_v60  ;;  %v1918_v38 = vld [vmem:[#allocation7 + $0x40] ss:$0 sm:$0xff] }
0x11e3   :  { %2051 = vtanh.f32 %v1560_v41 }
0x11e4   :  { %2053 = vpow2.f32 %v1911_v25 }
0x11f0   :  { %v2052_v33 = vpop.eup %2051 }
0x11f1   :  { %1563 = vrot.lane.b32.xlu1 %v2052_v33, %s2178_s0  ;;  %v2054_v39 = vpop.eup %2053 }
0x11f2   :  { %v1544_v32 = vadd.f32 1.0, %v2054_v39 }
0x11f4   :  { %2055 = vrcp.f32 %v1544_v32 }
0x1201   :  { %v2056_v43 = vpop.eup %2055 }
0x1263   :  { %v1564_v6 = vpop.permute.xlu1 %1563 }
0x1264   :  { %v1566_v16 = vmul.f32 %v2056_v43, %v1564_v6 }
0x1266   :  { %v1567_v18 = vadd.f32 %v1566_v16, %v1460_v3  ;;  %1912 = vmatmul.mubr.msk.f32.vlgmr.msra.gmra.mxu0 %vm559_vm1, %v1566_v16 }
0x1267   :  { %1930 = vmatpush3.msra.mxu0 %v1793_v10  ;;  %1945 = vmatprep.mubr.msk.f32.mxu0 %vm2179_vm5, %v2177_v0 }
0x1268   :  { %1931 = vmatprep.subr.mxu0 %v2177_v0 }
0x1269   :  { %1932 = vmatpush3.msra.mxu0 %v1792_v29 }
0x126a   :  { %1933 = vmatprep.subr.mxu0 %v2177_v0 }
0x126b   :  { %1934 = vmatpush3.msra.mxu0 %v1791_v35 }
0x126c   :  { %1935 = vmatprep.subr.mxu0 %v2177_v0 }
0x126d   :  { %1936 = vmatpush3.msra.mxu0 %v1790_v45 }
0x126e   :  { %1937 = vmatprep.subr.mxu0 %v2177_v0 }
0x1326   :  { %v1639_v19 = vpop.f32.mrf.mxu0 }
0x1327   :  { %v1644_v20 = vadd.f32 %v1639_v19, %v1568_v8 }
0x1328   :  { %v1641_v36 = vpop.f32.mrf.mxu0 }
0x1329   :  { %v1645_v22 = vadd.f32 %v1641_v36, %v1569_v30  ;;  %v1913_v7 = vmul.f32 -1.442695, %v1644_v20 }
0x132b   :  { %2057 = vtanh.f32 %v1645_v22  ;;  %v1914_v5 = vmul.f32 -1.442695, %v1645_v22 }
0x132c   :  { %2059 = vpow2.f32 %v1913_v7 }
0x1338   :  { %v2058_v24 = vpop.eup %2057 }
0x1339   :  { %1661 = vrot.lane.b32.xlu0 %v2058_v24, %s2178_s0  ;;  %v2060_v47 = vpop.eup %2059 }
0x133a   :  { %v1652_v12 = vadd.f32 1.0, %v2060_v47 }
0x133c   :  { %2061 = vrcp.f32 %v1652_v12 }
0x1349   :  { %v2062_v26 = vpop.eup %2061 }
0x134a   :  { %v1659_v40 = vmul.f32 %v2062_v26, %v1560_v41 }
0x13ab   :  { %v1662_v28 = vpop.permute.xlu0 %1661 }
0x13ac   :  { %v1664_v21 = vmul.f32 %v2062_v26, %v1662_v28 }
0x13ae   :  { %1666 = vrot.lane.b32.xlu1 %v1664_v21, %s2178_s0 }
0x1420   :  { %v1667_v8 = vpop.permute.xlu1 %1666 }
0x1421   :  { %v1669_v11 = vadd.f32 %v1667_v8, %v1659_v40 }
0x1423   :  { %2063 = vtanh.f32 %v1669_v11 }
0x1424   :  { %2065 = vpow2.f32 %v1914_v5 }
0x1430   :  { %v2064_v23 = vpop.eup %2063 }
0x1431   :  { %1672 = vrot.lane.b32.xlu0 %v2064_v23, %s2178_s0  ;;  %v2066_v30 = vpop.eup %2065 }
0x1432   :  { %v1653_v13 = vadd.f32 1.0, %v2066_v30 }
0x1434   :  { %2067 = vrcp.f32 %v1653_v13 }
0x1441   :  { %v2068_v31 = vpop.eup %2067 }
0x14a3   :  { %v1673_v42 = vpop.permute.xlu0 %1672 }
0x14a4   :  { %v1675_v48 = vmul.f32 %v2068_v31, %v1673_v42 }
0x14a6   :  { %v1676_v58 = vadd.f32 %v1675_v48, %v1567_v18  ;;  %1915 = vmatmul.mubr.msk.f32.vlgmr.msra.gmra.mxu1 %vm559_vm1, %v1675_v48 }
0x1566   :  { %v1748_v61 = vpop.f32.mrf.mxu1 }
0x1567   :  { %v1753_v37 = vadd.f32 %v1748_v61, %v1677_v46  ;;  %v1789_v46 = vld [vmem:[#allocation7 + $0x18] sm:$0xff] }
0x1568   :  { %v1750_v62 = vpop.f32.mrf.mxu1  ;;  %1938 = vmatpush3.msra.mxu0 %v1789_v46 }
0x1569   :  { %v1754_v9 = vadd.f32 %v1750_v62, %v1678_v44  ;;  %v1916_v63 = vmul.f32 -1.442695, %v1753_v37  ;;  %v1788_v44 = vld [vmem:[#allocation7 + $0x10] sm:$0xff]  ;;  %1939 = vmatprep.subr.mxu0 %v2177_v0 }
0x156a   :  { %1940 = vmatpush3.msra.mxu0 %v1788_v44 }
0x156b   :  { %2069 = vtanh.f32 %v1754_v9  ;;  %1941 = vmatprep.subr.mxu0 %v2177_v0  ;;  %v1917_v54 = vmul.f32 -1.442695, %v1754_v9 }
0x156c   :  { %2071 = vpow2.f32 %v1916_v63  ;;  %1942 = vmatpush3.msra.mxu0 %v1787_v51 }
0x156d   :  { %1943 = vmatprep.subr.mxu0 %v2177_v0 }
0x156e   :  { %1944 = vmatpush3.msra.mxu0 %v1786_v52 }
0x1578   :  { %v2070_v14 = vpop.eup %2069 }
0x1579   :  { %1770 = vrot.lane.b32.xlu1 %v2070_v14, %s2178_s0  ;;  %v2072_v1 = vpop.eup %2071 }
0x157a   :  { %v1761_v2 = vadd.f32 1.0, %v2072_v1 }
0x157c   :  { %2073 = vrcp.f32 %v1761_v2 }
0x1589   :  { %v2074_v27 = vpop.eup %2073 }
0x158a   :  { %v1768_v15 = vmul.f32 %v2074_v27, %v1669_v11 }
0x15eb   :  { %v1771_v4 = vpop.permute.xlu1 %1770 }
0x15ec   :  { %v1773_v17 = vmul.f32 %v2074_v27, %v1771_v4 }
0x15ee   :  { %1775 = vrot.lane.b32.xlu0 %v1773_v17, %s2178_s0 }
0x1660   :  { %v1776_v49 = vpop.permute.xlu0 %1775 }
0x1661   :  { %v1778_v50 = vadd.f32 %v1776_v49, %v1768_v15 }
0x1663   :  { %2075 = vtanh.f32 %v1778_v50 }
0x1664   :  { %2077 = vpow2.f32 %v1917_v54 }
0x1670   :  { %v2076_v53 = vpop.eup %2075 }
0x1671   :  { %1781 = vrot.lane.b32.xlu1 %v2076_v53, %s2178_s0  ;;  %v2078_v55 = vpop.eup %2077 }
0x1672   :  { %v1762_v56 = vadd.f32 1.0, %v2078_v55 }
0x1674   :  { %2079 = vrcp.f32 %v1762_v56 }
0x1681   :  { %v2080_v57 = vpop.eup %2079 }
0x16e3   :  { %v1782_v34 = vpop.permute.xlu1 %1781 }
0x16e4   :  { %v1784_v59 = vmul.f32 %v2080_v57, %v1782_v34 }
0x16e6   :  { %v1785_v60 = vadd.f32 %v1784_v59, %v1676_v58 }
0x16e8   :  { %1946 = vmatmul.mubr.msk.f32.vlgmr.msra.gmra.mxu0 %vm559_vm1, %v1785_v60 }
0x17a8   :  { %v1868_v41 = vpop.f32.mrf.mxu0 }
0x17a9   :  { %v1869_v33 = vadd.f32 %v1918_v38, %v1868_v41 }
0x17aa   :  { %v1947_v25 = vpop.f32.mrf.mxu0 }
0x17ab   :  { %1872 = vst [vmem:[%s2727_s5] sm:$0xff] %v1869_v33 }
0x17ac   :  { %1877 = vsyncpa [#allocation3], 1 }
0x17ad   :  { %1878 = vsyncpa [#allocation5], 1 }
0x17ae   :  { %1879 = vsyncpa [#allocation8], 1 }

</bundles_post_ra>
